<compile_context>
chip_gen: v5e
topology: v5e:2x2
jax: 0.10.0
libtpu: 0.0.40
codegen_flags: <defaults>
</compile_context>

<pallas_src>
import functools

import jax
import jax.numpy as jnp
from jax.experimental import pallas as pl
from jax.experimental.pallas import tpu as pltpu

LANE = 128
XW_RESIDENT_MAX_BYTES = 8 * 1024 * 1024   # keep XW VMEM-resident below this


def _round_up(x, m):
    return ((x + m - 1) // m) * m


def _pick_tiles(n):
    """Aggregation tiles: big DMAs, but never much bigger than the graph."""
    # Neighbor / reduction tile: multiple of 128 lanes, capped at 2048.
    tile_k = min(2048, _round_up(n, LANE))
    # Row tile: multiple of 8 sublanes, capped at 512, and small enough that
    # there are >= 2 row tiles (so v7x's two TensorCores both get work).
    tile_n = min(512, _round_up(-(-n // 2), 8))
    return tile_n, tile_k


def _fit_rows(h, rows):
    cur = h.shape[0]
    if cur == rows:
        return h
    if cur > rows:
        return h[:rows]
    return jnp.pad(h, ((0, rows - cur), (0, 0)))


# ---------------------------------------------------------------------------
# Kernel 1: feature transform  XW = H @ W   (used only when K >= 128)
# ---------------------------------------------------------------------------
def _xw_kernel(x_ref, w_ref, o_ref):
    o_ref[...] = jnp.dot(
        x_ref[...], w_ref[...], preferred_element_type=jnp.float32
    ).astype(o_ref.dtype)


def feature_transform(x, w, *, tile_rows, out_dtype=jnp.bfloat16):
    rows, f_in = x.shape
    f_out = w.shape[1]
    assert rows % tile_rows == 0
    return pl.pallas_call(
        _xw_kernel,
        out_shape=jax.ShapeDtypeStruct((rows, f_out), out_dtype),
        grid_spec=pltpu.PrefetchScalarGridSpec(
            num_scalar_prefetch=0,
            grid=(rows // tile_rows,),
            in_specs=[
                pl.BlockSpec((tile_rows, f_in), lambda i: (i, 0)),  # row tile
                pl.BlockSpec((f_in, f_out), lambda i: (0, 0)),      # full W
            ],
            out_specs=pl.BlockSpec((tile_rows, f_out), lambda i: (i, 0)),
        ),
        compiler_params=pltpu.CompilerParams(
            dimension_semantics=("parallel",),
        ),
    )(x, w)


# ---------------------------------------------------------------------------
# Kernel 2: neighbor aggregation  O = A_hat @ XW + b  (+ optional ReLU)
#           K-tiled over the neighbor dimension.
# ---------------------------------------------------------------------------
def _xw_ktile(xw_ref, k, tile_k, xw_resident):
    if xw_resident:
        start = pl.multiple_of(k * tile_k, LANE)
        return xw_ref[pl.ds(start, tile_k), :]
    return xw_ref[...]


def _agg_kernel_acc(a_ref, xw_ref, b_ref, o_ref, acc_ref, *,
                    apply_relu, xw_resident, tile_k):
    """f32 scratch accumulator; output cast (e.g. bf16) in the epilogue."""
    k = pl.program_id(1)

    @pl.when(k == 0)
    def _():
        acc_ref[...] = jnp.zeros_like(acc_ref)

    xw = _xw_ktile(xw_ref, k, tile_k, xw_resident)
    acc_ref[...] += jnp.dot(a_ref[...], xw, preferred_element_type=jnp.float32)

    @pl.when(k == pl.num_programs(1) - 1)
    def _():
        out = acc_ref[...] + b_ref[...]          # f32 epilogue (v5e-safe)
        if apply_relu:
            out = jnp.maximum(out, 0.0)
        o_ref[...] = out.astype(o_ref.dtype)


def _agg_kernel_inplace(a_ref, xw_ref, b_ref, o_ref, *,
                        apply_relu, xw_resident, tile_k):
    """f32 output: accumulate directly into the resident output block."""
    k = pl.program_id(1)
    xw = _xw_ktile(xw_ref, k, tile_k, xw_resident)
    part = jnp.dot(a_ref[...], xw, preferred_element_type=jnp.float32)

    @pl.when(k == 0)
    def _():
        o_ref[...] = part

    @pl.when(k > 0)
    def _():
        o_ref[...] += part

    @pl.when(k == pl.num_programs(1) - 1)
    def _():
        out = o_ref[...] + b_ref[...]
        if apply_relu:
            out = jnp.maximum(out, 0.0)
        o_ref[...] = out


def aggregate(a_pad, xw, b_pad, *, apply_relu, tile_n, tile_k, out_dtype):
    n_rows_pad, n_k_pad = a_pad.shape
    f_pad = xw.shape[1]
    assert n_rows_pad % tile_n == 0 and n_k_pad % tile_k == 0

    xw_bytes_total = n_k_pad * f_pad * jnp.dtype(xw.dtype).itemsize
    xw_resident = xw_bytes_total <= XW_RESIDENT_MAX_BYTES
    if xw_resident:
        # Constant block index => XW is DMA'd once and stays VMEM-resident.
        xw_spec = pl.BlockSpec((n_k_pad, f_pad), lambda i, k: (0, 0))
    else:
        xw_spec = pl.BlockSpec((tile_k, f_pad), lambda i, k: (k, 0))

    use_acc = jnp.dtype(out_dtype) != jnp.dtype(jnp.float32)
    if use_acc:
        kernel = functools.partial(_agg_kernel_acc, apply_relu=apply_relu,
                                   xw_resident=xw_resident, tile_k=tile_k)
        scratch = [pltpu.VMEM((tile_n, f_pad), jnp.float32)]
    else:
        kernel = functools.partial(_agg_kernel_inplace, apply_relu=apply_relu,
                                   xw_resident=xw_resident, tile_k=tile_k)
        scratch = []

    # Size the scoped-VMEM request from the actual working set (double-buffered
    # streams + resident pieces), with headroom; never ask for v7x's full 64MiB.
    out_isz = jnp.dtype(out_dtype).itemsize
    est = (tile_n * tile_k * 2 * 2                                  # A tiles
           + (xw_bytes_total if xw_resident else tile_k * f_pad * 2 * 2)
           + tile_n * f_pad * out_isz * 2                           # out tiles
           + (tile_n * f_pad * 4 if use_acc else 0)                 # acc
           + 8 * f_pad * 4 * 2)                                     # bias
    vmem_limit = int(min(48 * 1024 * 1024, max(32 * 1024 * 1024, 2 * est)))

    return pl.pallas_call(
        kernel,
        out_shape=jax.ShapeDtypeStruct((n_rows_pad, f_pad), out_dtype),
        grid_spec=pltpu.PrefetchScalarGridSpec(
            num_scalar_prefetch=0,
            grid=(n_rows_pad // tile_n, n_k_pad // tile_k),
            in_specs=[
                pl.BlockSpec((tile_n, tile_k), lambda i, k: (i, k)),  # A_hat
                xw_spec,                                              # XW
                pl.BlockSpec((1, f_pad), lambda i, k: (0, 0)),        # bias
            ],
            out_specs=pl.BlockSpec((tile_n, f_pad), lambda i, k: (i, 0)),
            scratch_shapes=scratch,
        ),
        compiler_params=pltpu.CompilerParams(
            dimension_semantics=("parallel", "arbitrary"),
            vmem_limit_bytes=vmem_limit,
        ),
    )(a_pad, xw, b_pad)


# ---------------------------------------------------------------------------
# GCN forward
# ---------------------------------------------------------------------------
def prepare_adjacency(a_hat, *, tile_n, tile_k):
    """Pad + bf16-cast A_hat ONCE (hoisted out of the per-call forward)."""
    n = a_hat.shape[0]
    n_rows_pad = _round_up(n, tile_n)
    n_k_pad = _round_up(n, tile_k)
    a_pad = jnp.zeros((n_rows_pad, n_k_pad), jnp.bfloat16)
    return a_pad.at[:n, :n].set(a_hat.astype(jnp.bfloat16))


def _gcn_layer(a_pad, h, w, b, *, apply_relu, tile_n, tile_k, out_dtype):
    n_rows_pad, n_k_pad = a_pad.shape
    f_in, f_out = w.shape
    f_in_h = h.shape[1]
    assert f_in <= f_in_h
    f_pad = _round_up(f_out, LANE)

    # Zero-pad W/b to 128 lanes: every output store is an unmasked lane-dense
    # vst; padded input columns of h hit zero rows of W (no effect).
    w_pad = jnp.zeros((f_in_h, f_pad), jnp.float32).at[:f_in, :f_out].set(w)
    b_pad = jnp.zeros((1, f_pad), jnp.float32).at[:, :f_out].set(b)

    h = _fit_rows(h, n_k_pad)                    # match A_hat's neighbor axis

    if f_in_h < LANE:
        # Tiny, lane-sparse contraction (layer 1: K=16) -> a dedicated MXU
        # kernel would idle >90% of the systolic K dim; plain XLA dot wins.
        xw = jnp.dot(h.astype(jnp.float32), w_pad,
                     preferred_element_type=jnp.float32).astype(jnp.bfloat16)
    else:
        xw = feature_transform(h.astype(jnp.bfloat16),
                               w_pad.astype(jnp.bfloat16),
                               tile_rows=min(tile_k, n_k_pad))

    out = aggregate(a_pad, xw, b_pad, apply_relu=apply_relu,
                    tile_n=tile_n, tile_k=tile_k, out_dtype=out_dtype)
    return out, f_out


def gcn_forward(a_pad, x, params, *, tile_n, tile_k):
    n = x.shape[0]
    # Layer 1: bf16 intermediate (halves H1 writeback + layer-2 reads).
    h, _ = _gcn_layer(a_pad, x, params["w1"], params["b1"],
                      apply_relu=True, tile_n=tile_n, tile_k=tile_k,
                      out_dtype=jnp.bfloat16)
    # Layer 2: f32 logits, accumulated directly into the output block.
    h, f_out = _gcn_layer(a_pad, h, params["w2"], params["b2"],
                          apply_relu=False, tile_n=tile_n, tile_k=tile_k,
                          out_dtype=jnp.float32)
    return h[:n, :f_out]


# ---------------------------------------------------------------------------
# Reference / setup glue
# ---------------------------------------------------------------------------
def gcn_reference(a_hat, x, params):
    """Pure-JAX reference mirroring the kernel's bf16 streams exactly."""
    a_bf = a_hat.astype(jnp.bfloat16)
    xw1 = jnp.dot(x, params["w1"],
                  preferred_element_type=jnp.float32).astype(jnp.bfloat16)
    h1 = jnp.dot(a_bf, xw1, preferred_element_type=jnp.float32) + params["b1"]
    h1 = jnp.maximum(h1, 0.0).astype(jnp.bfloat16)
    xw2 = jnp.dot(h1, params["w2"].astype(jnp.bfloat16),
                  preferred_element_type=jnp.float32).astype(jnp.bfloat16)
    return jnp.dot(a_bf, xw2, preferred_element_type=jnp.float32) + params["b2"]


def _glorot(key, shape):
    fan_in, fan_out = shape
    limit = jnp.sqrt(6.0 / (fan_in + fan_out))
    return jax.random.uniform(key, shape, jnp.float32, -limit, limit)


def _build_graph(key, n):
    """Random symmetric adjacency; returns normalized A_hat with self-loops."""
    a = (jax.random.uniform(key, (n, n)) < 0.05).astype(jnp.float32)
    a = jnp.maximum(a, a.T)                      # undirected
    a = a + jnp.eye(n, dtype=jnp.float32)        # dgl.add_self_loop(g)
    a = jnp.minimum(a, 1.0)
    deg = jnp.sum(a, axis=1)
    d_inv_sqrt = 1.0 / jnp.sqrt(deg)
    return a * d_inv_sqrt[:, None] * d_inv_sqrt[None, :]


if __name__ == "__main__":
    N, IN_FEATS, H_FEATS, NUM_CLASSES = 512, 16, 32, 8

    key = jax.random.PRNGKey(0)
    k_g, k_x, k_w1, k_w2 = jax.random.split(key, 4)

    a_hat = _build_graph(k_g, N)
    x = jax.random.normal(k_x, (N, IN_FEATS), jnp.float32)

    params = {
        "w1": _glorot(k_w1, (IN_FEATS, H_FEATS)),
        "b1": jnp.zeros((1, H_FEATS), jnp.float32),
        "w2": _glorot(k_w2, (H_FEATS, NUM_CLASSES)),
        "b2": jnp.zeros((1, NUM_CLASSES), jnp.float32),
    }

    tile_n, tile_k = _pick_tiles(N)              # (256, 512) for N=512
    # Padded bf16 A_hat built once, outside the per-call forward (amortized).
    a_pad = jax.block_until_ready(
        prepare_adjacency(a_hat, tile_n=tile_n, tile_k=tile_k))

    fwd = jax.jit(functools.partial(gcn_forward, tile_n=tile_n, tile_k=tile_k))
    out = jax.block_until_ready(fwd(a_pad, x, params))
    ref = gcn_reference(a_hat, x, params)

    assert out.shape == (N, NUM_CLASSES)
    assert jnp.allclose(out, ref, atol=1e-2, rtol=1e-2), float(
        jnp.max(jnp.abs(out - ref)))

    print("KERNEL_OK")
</pallas_src>

<mosaic_0001>
module attributes {stable_mosaic.version = 11 : i64} {
  func.func @_agg_kernel_acc(%arg0: i32, %arg1: i32, %arg2: memref<256x512xbf16, #tpu.memory_space<vmem>>, %arg3: memref<512x128xbf16, #tpu.memory_space<vmem>>, %arg4: memref<1x128xf32, #tpu.memory_space<vmem>>, %arg5: memref<256x128xbf16, #tpu.memory_space<vmem>>, %arg6: memref<256x128xf32, #tpu.memory_space<vmem>>) attributes {dimension_semantics = [#tpu.dimension_semantics<parallel>, #tpu.dimension_semantics<arbitrary>], iteration_bounds = array<i64: 2, 1>, scalar_prefetch = 0 : i64, scratch_operands = 1 : i64, tpu.core_type = #tpu.core_type<tc>, window_params = [{transform_indices = @transform_0, window_bounds = array<i64: 256, 512>}, {pipeline_mode = #tpu.pipeline_mode<synchronous>, transform_indices = @transform_1, window_bounds = array<i64: 512, 128>}, {pipeline_mode = #tpu.pipeline_mode<synchronous>, transform_indices = @transform_2, window_bounds = array<i64: 1, 128>}, {transform_indices = @transform_3, window_bounds = array<i64: 256, 128>}]} {
    %c0_i32 = arith.constant 0 : i32
    %0 = arith.cmpi eq, %arg1, %c0_i32 : i32
    %1 = arith.extui %0 : i1 to i32
    %c0_i32_0 = arith.constant 0 : i32
    %2 = arith.cmpi ne, %1, %c0_i32_0 : i32
    scf.if %2 {
      %cst_9 = arith.constant 0.000000e+00 : f32
      %15 = vector.broadcast %cst_9 : f32 to vector<256x128xf32>
      %c0_10 = arith.constant 0 : index
      %c0_11 = arith.constant 0 : index
      %16 = vector.load %arg6[%c0_10, %c0_11] : memref<256x128xf32, #tpu.memory_space<vmem>>, vector<256x128xf32>
      tpu.vector_store %arg6[%c0_10, %c0_11], %15 {strides = array<i32>} : memref<256x128xf32, #tpu.memory_space<vmem>>, vector<256x128xf32>,
    } else {
    }
    %c512_i32 = arith.constant 512 : i32
    %3 = arith.muli %arg1, %c512_i32 : i32
    %4 = tpu.assume_multiple %3, 128 : i32
    %5 = arith.index_cast %4 : i32 to index
    %c0 = arith.constant 0 : index
    %6 = vector.load %arg3[%5, %c0] : memref<512x128xbf16, #tpu.memory_space<vmem>>, vector<512x128xbf16>
    %c0_1 = arith.constant 0 : index
    %c0_2 = arith.constant 0 : index
    %7 = vector.load %arg6[%c0_1, %c0_2] : memref<256x128xf32, #tpu.memory_space<vmem>>, vector<256x128xf32>
    %c0_3 = arith.constant 0 : index
    %c0_4 = arith.constant 0 : index
    %8 = vector.load %arg2[%c0_3, %c0_4] : memref<256x512xbf16, #tpu.memory_space<vmem>>, vector<256x512xbf16>
    %cst = arith.constant dense<0.000000e+00> : vector<256x128xf32>
    %9 = tpu.matmul %8, %6, %cst {dimension_numbers = #tpu.dot_dimension_numbers<[1], [0], [0], [1], [0, 0, 1, 1], [], []>} : vector<256x512xbf16>, vector<512x128xbf16>, vector<256x128xf32> -> vector<256x128xf32>
    %10 = arith.addf %7, %9 : vector<256x128xf32>
    %c0_5 = arith.constant 0 : index
    %c0_6 = arith.constant 0 : index
    %11 = vector.load %arg6[%c0_5, %c0_6] : memref<256x128xf32, #tpu.memory_space<vmem>>, vector<256x128xf32>
    tpu.vector_store %arg6[%c0_5, %c0_6], %10 {strides = array<i32>} : memref<256x128xf32, #tpu.memory_space<vmem>>, vector<256x128xf32>,
    %c0_i32_7 = arith.constant 0 : i32
    %12 = arith.cmpi eq, %arg1, %c0_i32_7 : i32
    %13 = arith.extui %12 : i1 to i32
    %c0_i32_8 = arith.constant 0 : i32
    %14 = arith.cmpi ne, %13, %c0_i32_8 : i32
    scf.if %14 {
      %c0_9 = arith.constant 0 : index
      %c0_10 = arith.constant 0 : index
      %15 = vector.load %arg6[%c0_9, %c0_10] : memref<256x128xf32, #tpu.memory_space<vmem>>, vector<256x128xf32>
      %c0_11 = arith.constant 0 : index
      %c0_12 = arith.constant 0 : index
      %16 = vector.load %arg4[%c0_11, %c0_12] : memref<1x128xf32, #tpu.memory_space<vmem>>, vector<1x128xf32>
      %17 = vector.broadcast %16 : vector<1x128xf32> to vector<256x128xf32>
      %18 = arith.addf %15, %17 : vector<256x128xf32>
      %cst_13 = arith.constant 0.000000e+00 : f32
      %19 = vector.broadcast %cst_13 : f32 to vector<256x128xf32>
      %20 = arith.maximumf %18, %19 : vector<256x128xf32>
      %21 = arith.truncf %20 : vector<256x128xf32> to vector<256x128xbf16>
      %c0_14 = arith.constant 0 : index
      %c0_15 = arith.constant 0 : index
      %22 = vector.load %arg5[%c0_14, %c0_15] : memref<256x128xbf16, #tpu.memory_space<vmem>>, vector<256x128xbf16>
      tpu.vector_store %arg5[%c0_14, %c0_15], %21 {strides = array<i32>} : memref<256x128xbf16, #tpu.memory_space<vmem>>, vector<256x128xbf16>,
    } else {
    }
    return
  }
  func.func @transform_0(%arg0: i32, %arg1: i32) -> (i32, i32) {
    %c0_i32 = arith.constant 0 : i32
    return %arg0, %arg1 : i32, i32
  }
  func.func @transform_1(%arg0: i32, %arg1: i32) -> (i32, i32) {
    %c0_i32 = arith.constant 0 : i32
    %c0_i32_0 = arith.constant 0 : i32
    %c0_i32_1 = arith.constant 0 : i32
    return %c0_i32, %c0_i32_0 : i32, i32
  }
  func.func @transform_2(%arg0: i32, %arg1: i32) -> (i32, i32) {
    %c0_i32 = arith.constant 0 : i32
    %c0_i32_0 = arith.constant 0 : i32
    %c0_i32_1 = arith.constant 0 : i32
    return %c0_i32, %c0_i32_0 : i32, i32
  }
  func.func @transform_3(%arg0: i32, %arg1: i32) -> (i32, i32) {
    %c0_i32 = arith.constant 0 : i32
    %c0_i32_0 = arith.constant 0 : i32
    return %arg0, %c0_i32 : i32, i32
  }
}

module attributes {stable_mosaic.version = 11 : i64} {
  func.func @_xw_kernel(%arg0: i32, %arg1: memref<512x128xbf16, #tpu.memory_space<vmem>>, %arg2: memref<128x128xbf16, #tpu.memory_space<vmem>>, %arg3: memref<512x128xbf16, #tpu.memory_space<vmem>>) attributes {dimension_semantics = [#tpu.dimension_semantics<parallel>], iteration_bounds = array<i64: 1>, scalar_prefetch = 0 : i64, scratch_operands = 0 : i64, tpu.core_type = #tpu.core_type<tc>, window_params = [{transform_indices = @transform_0, window_bounds = array<i64: 512, 128>}, {pipeline_mode = #tpu.pipeline_mode<synchronous>, transform_indices = @transform_1, window_bounds = array<i64: 128, 128>}, {transform_indices = @transform_2, window_bounds = array<i64: 512, 128>}]} {
    %c0 = arith.constant 0 : index
    %c0_0 = arith.constant 0 : index
    %0 = vector.load %arg1[%c0, %c0_0] : memref<512x128xbf16, #tpu.memory_space<vmem>>, vector<512x128xbf16>
    %c0_1 = arith.constant 0 : index
    %c0_2 = arith.constant 0 : index
    %1 = vector.load %arg2[%c0_1, %c0_2] : memref<128x128xbf16, #tpu.memory_space<vmem>>, vector<128x128xbf16>
    %cst = arith.constant dense<0.000000e+00> : vector<512x128xf32>
    %2 = tpu.matmul %0, %1, %cst {dimension_numbers = #tpu.dot_dimension_numbers<[1], [0], [0], [1], [0, 0, 1, 1], [], []>} : vector<512x128xbf16>, vector<128x128xbf16>, vector<512x128xf32> -> vector<512x128xf32>
    %3 = arith.truncf %2 : vector<512x128xf32> to vector<512x128xbf16>
    %c0_3 = arith.constant 0 : index
    %c0_4 = arith.constant 0 : index
    %4 = vector.load %arg3[%c0_3, %c0_4] : memref<512x128xbf16, #tpu.memory_space<vmem>>, vector<512x128xbf16>
    tpu.vector_store %arg3[%c0_3, %c0_4], %3 {strides = array<i32>} : memref<512x128xbf16, #tpu.memory_space<vmem>>, vector<512x128xbf16>,
    return
  }
  func.func @transform_0(%arg0: i32) -> (i32, i32) {
    %c0_i32 = arith.constant 0 : i32
    %c0_i32_0 = arith.constant 0 : i32
    return %arg0, %c0_i32 : i32, i32
  }
  func.func @transform_1(%arg0: i32) -> (i32, i32) {
    %c0_i32 = arith.constant 0 : i32
    %c0_i32_0 = arith.constant 0 : i32
    %c0_i32_1 = arith.constant 0 : i32
    return %c0_i32, %c0_i32_0 : i32, i32
  }
  func.func @transform_2(%arg0: i32) -> (i32, i32) {
    %c0_i32 = arith.constant 0 : i32
    %c0_i32_0 = arith.constant 0 : i32
    return %arg0, %c0_i32 : i32, i32
  }
}

module attributes {stable_mosaic.version = 11 : i64} {
  func.func @_agg_kernel_inplace(%arg0: i32, %arg1: i32, %arg2: memref<256x512xbf16, #tpu.memory_space<vmem>>, %arg3: memref<512x128xbf16, #tpu.memory_space<vmem>>, %arg4: memref<1x128xf32, #tpu.memory_space<vmem>>, %arg5: memref<256x128xf32, #tpu.memory_space<vmem>>) attributes {dimension_semantics = [#tpu.dimension_semantics<parallel>, #tpu.dimension_semantics<arbitrary>], iteration_bounds = array<i64: 2, 1>, scalar_prefetch = 0 : i64, scratch_operands = 0 : i64, tpu.core_type = #tpu.core_type<tc>, window_params = [{transform_indices = @transform_0, window_bounds = array<i64: 256, 512>}, {pipeline_mode = #tpu.pipeline_mode<synchronous>, transform_indices = @transform_1, window_bounds = array<i64: 512, 128>}, {pipeline_mode = #tpu.pipeline_mode<synchronous>, transform_indices = @transform_2, window_bounds = array<i64: 1, 128>}, {transform_indices = @transform_3, window_bounds = array<i64: 256, 128>}]} {
    %c512_i32 = arith.constant 512 : i32
    %0 = arith.muli %arg1, %c512_i32 : i32
    %1 = tpu.assume_multiple %0, 128 : i32
    %2 = arith.index_cast %1 : i32 to index
    %c0 = arith.constant 0 : index
    %3 = vector.load %arg3[%2, %c0] : memref<512x128xbf16, #tpu.memory_space<vmem>>, vector<512x128xbf16>
    %c0_0 = arith.constant 0 : index
    %c0_1 = arith.constant 0 : index
    %4 = vector.load %arg2[%c0_0, %c0_1] : memref<256x512xbf16, #tpu.memory_space<vmem>>, vector<256x512xbf16>
    %cst = arith.constant dense<0.000000e+00> : vector<256x128xf32>
    %5 = tpu.matmul %4, %3, %cst {dimension_numbers = #tpu.dot_dimension_numbers<[1], [0], [0], [1], [0, 0, 1, 1], [], []>} : vector<256x512xbf16>, vector<512x128xbf16>, vector<256x128xf32> -> vector<256x128xf32>
    %c0_i32 = arith.constant 0 : i32
    %6 = arith.cmpi eq, %arg1, %c0_i32 : i32
    %7 = arith.extui %6 : i1 to i32
    %c0_i32_2 = arith.constant 0 : i32
    %8 = arith.cmpi ne, %7, %c0_i32_2 : i32
    scf.if %8 {
      %c0_7 = arith.constant 0 : index
      %c0_8 = arith.constant 0 : index
      %15 = vector.load %arg5[%c0_7, %c0_8] : memref<256x128xf32, #tpu.memory_space<vmem>>, vector<256x128xf32>
      tpu.vector_store %arg5[%c0_7, %c0_8], %5 {strides = array<i32>} : memref<256x128xf32, #tpu.memory_space<vmem>>, vector<256x128xf32>,
    } else {
    }
    %c0_i32_3 = arith.constant 0 : i32
    %9 = arith.cmpi sgt, %arg1, %c0_i32_3 : i32
    %10 = arith.extui %9 : i1 to i32
    %c0_i32_4 = arith.constant 0 : i32
    %11 = arith.cmpi ne, %10, %c0_i32_4 : i32
    scf.if %11 {
      %c0_7 = arith.constant 0 : index
      %c0_8 = arith.constant 0 : index
      %15 = vector.load %arg5[%c0_7, %c0_8] : memref<256x128xf32, #tpu.memory_space<vmem>>, vector<256x128xf32>
      %16 = arith.addf %15, %5 : vector<256x128xf32>
      %c0_9 = arith.constant 0 : index
      %c0_10 = arith.constant 0 : index
      %17 = vector.load %arg5[%c0_9, %c0_10] : memref<256x128xf32, #tpu.memory_space<vmem>>, vector<256x128xf32>
      tpu.vector_store %arg5[%c0_9, %c0_10], %16 {strides = array<i32>} : memref<256x128xf32, #tpu.memory_space<vmem>>, vector<256x128xf32>,
    } else {
    }
    %c0_i32_5 = arith.constant 0 : i32
    %12 = arith.cmpi eq, %arg1, %c0_i32_5 : i32
    %13 = arith.extui %12 : i1 to i32
    %c0_i32_6 = arith.constant 0 : i32
    %14 = arith.cmpi ne, %13, %c0_i32_6 : i32
    scf.if %14 {
      %c0_7 = arith.constant 0 : index
      %c0_8 = arith.constant 0 : index
      %15 = vector.load %arg5[%c0_7, %c0_8] : memref<256x128xf32, #tpu.memory_space<vmem>>, vector<256x128xf32>
      %c0_9 = arith.constant 0 : index
      %c0_10 = arith.constant 0 : index
      %16 = vector.load %arg4[%c0_9, %c0_10] : memref<1x128xf32, #tpu.memory_space<vmem>>, vector<1x128xf32>
      %17 = vector.broadcast %16 : vector<1x128xf32> to vector<256x128xf32>
      %18 = arith.addf %15, %17 : vector<256x128xf32>
      %c0_11 = arith.constant 0 : index
      %c0_12 = arith.constant 0 : index
      %19 = vector.load %arg5[%c0_11, %c0_12] : memref<256x128xf32, #tpu.memory_space<vmem>>, vector<256x128xf32>
      tpu.vector_store %arg5[%c0_11, %c0_12], %18 {strides = array<i32>} : memref<256x128xf32, #tpu.memory_space<vmem>>, vector<256x128xf32>,
    } else {
    }
    return
  }
  func.func @transform_0(%arg0: i32, %arg1: i32) -> (i32, i32) {
    %c0_i32 = arith.constant 0 : i32
    return %arg0, %arg1 : i32, i32
  }
  func.func @transform_1(%arg0: i32, %arg1: i32) -> (i32, i32) {
    %c0_i32 = arith.constant 0 : i32
    %c0_i32_0 = arith.constant 0 : i32
    %c0_i32_1 = arith.constant 0 : i32
    return %c0_i32, %c0_i32_0 : i32, i32
  }
  func.func @transform_2(%arg0: i32, %arg1: i32) -> (i32, i32) {
    %c0_i32 = arith.constant 0 : i32
    %c0_i32_0 = arith.constant 0 : i32
    %c0_i32_1 = arith.constant 0 : i32
    return %c0_i32, %c0_i32_0 : i32, i32
  }
  func.func @transform_3(%arg0: i32, %arg1: i32) -> (i32, i32) {
    %c0_i32 = arith.constant 0 : i32
    %c0_i32_0 = arith.constant 0 : i32
    return %arg0, %c0_i32 : i32, i32
  }
}

</mosaic_0001>

<bundles_post_ra>
// kernel: gcn_forward.4
= control target key start
LH: loop header
LB: loop body
LE: loop exit
PB: predicated region body
PF: predicated region fallthrough
CT: control target
= control target key end

     0   :  { %s1278_s1 = inlined_call_operand.vmem [shape: bf16[128,128], index: 1, kind: input, shape index: {}]   ;;  %s1279_s0 = inlined_call_operand.vmem [shape: bf16[512,128], index: 0, kind: input, shape index: {}]   ;;  %s1280_s2 = inlined_call_operand.vmem [shape: bf16[512,128], index: 2, kind: output, shape index: {}]  }
   0x1   :  { %v831_v0 = vld [vmem:[%s1278_s1 + $0x38] sm:$0xff]  ;;  %v830_v1 = vld [vmem:[%s1278_s1 + $0x30] sm:$0xff]  ;;  %v829_v2 = vld [vmem:[%s1278_s1 + $0x28] sm:$0xff] }
   0x2   :  { %331 = vmatpush.bf16.msra.mxu0 %v831_v0  ;;  %1023 = vmatpush.bf16.msra.mxu1 %v831_v0  ;;  %v828_v3 = vld [vmem:[%s1278_s1 + $0x20] sm:$0xff]  ;;  %v827_v4 = vld [vmem:[%s1278_s1 + $0x18] sm:$0xff]  ;;  %v826_v5 = vld [vmem:[%s1278_s1 + $0x10] sm:$0xff] }
   0x3   :  { %1024 = vmatpush.bf16.msra.mxu2 %v831_v0  ;;  %1025 = vmatpush.bf16.msra.mxu3 %v831_v0  ;;  %v825_v6 = vld [vmem:[%s1278_s1 + $0x8] sm:$0xff]  ;;  %v824_v7 = vld [vmem:[%s1278_s1] sm:$0xff]  ;;  %v794_v16 = vld [vmem:[%s1279_s0 + $0x10] sm:$0xff] }
   0x4   :  { %v792_v8 = vld [vmem:[%s1279_s0] sm:$0xff]  ;;  %v793_v12 = vld [vmem:[%s1279_s0 + $0x8] sm:$0xff]  ;;  %v802_v17 = vld [vmem:[%s1279_s0 + $0x50] sm:$0xff] }
   0x5   :  { %v800_v9 = vld [vmem:[%s1279_s0 + $0x40] sm:$0xff]  ;;  %v801_v13 = vld [vmem:[%s1279_s0 + $0x48] sm:$0xff]  ;;  %v810_v18 = vld [vmem:[%s1279_s0 + $0x90] sm:$0xff] }
   0x6   :  { %332 = vmatpush.bf16.msra.mxu0 %v830_v1  ;;  %1026 = vmatpush.bf16.msra.mxu1 %v830_v1  ;;  %v808_v10 = vld [vmem:[%s1279_s0 + $0x80] sm:$0xff]  ;;  %v809_v14 = vld [vmem:[%s1279_s0 + $0x88] sm:$0xff]  ;;  %v818_v19 = vld [vmem:[%s1279_s0 + $0xd0] sm:$0xff] }
   0x7   :  { %1027 = vmatpush.bf16.msra.mxu2 %v830_v1  ;;  %1028 = vmatpush.bf16.msra.mxu3 %v830_v1  ;;  %v816_v11 = vld [vmem:[%s1279_s0 + $0xc0] sm:$0xff]  ;;  %v817_v15 = vld [vmem:[%s1279_s0 + $0xc8] sm:$0xff]  ;;  %v795_v20 = vld [vmem:[%s1279_s0 + $0x18] sm:$0xff] }
   0x8   :  { %v803_v21 = vld [vmem:[%s1279_s0 + $0x58] sm:$0xff]  ;;  %v796_v24 = vld [vmem:[%s1279_s0 + $0x20] sm:$0xff]  ;;  %v797_v28 = vld [vmem:[%s1279_s0 + $0x28] sm:$0xff] }
   0x9   :  { %v811_v22 = vld [vmem:[%s1279_s0 + $0x98] sm:$0xff]  ;;  %v804_v25 = vld [vmem:[%s1279_s0 + $0x60] sm:$0xff]  ;;  %v805_v29 = vld [vmem:[%s1279_s0 + $0x68] sm:$0xff] }
   0xa   :  { %333 = vmatpush.bf16.msra.mxu0 %v829_v2  ;;  %1029 = vmatpush.bf16.msra.mxu1 %v829_v2  ;;  %v819_v23 = vld [vmem:[%s1279_s0 + $0xd8] sm:$0xff]  ;;  %v812_v26 = vld [vmem:[%s1279_s0 + $0xa0] sm:$0xff]  ;;  %v813_v30 = vld [vmem:[%s1279_s0 + $0xa8] sm:$0xff] }
   0xb   :  { %1030 = vmatpush.bf16.msra.mxu2 %v829_v2  ;;  %1031 = vmatpush.bf16.msra.mxu3 %v829_v2  ;;  %v820_v27 = vld [vmem:[%s1279_s0 + $0xe0] sm:$0xff]  ;;  %v821_v31 = vld [vmem:[%s1279_s0 + $0xe8] sm:$0xff]  ;;  %v798_v32 = vld [vmem:[%s1279_s0 + $0x30] sm:$0xff] }
   0xc   :  { %v806_v33 = vld [vmem:[%s1279_s0 + $0x70] sm:$0xff]  ;;  %v799_v36 = vld [vmem:[%s1279_s0 + $0x38] sm:$0xff] }
   0xd   :  { %v814_v34 = vld [vmem:[%s1279_s0 + $0xb0] sm:$0xff]  ;;  %v807_v37 = vld [vmem:[%s1279_s0 + $0x78] sm:$0xff] }
   0xe   :  { %334 = vmatpush.bf16.msra.mxu0 %v828_v3  ;;  %1032 = vmatpush.bf16.msra.mxu1 %v828_v3  ;;  %v822_v35 = vld [vmem:[%s1279_s0 + $0xf0] sm:$0xff]  ;;  %v815_v38 = vld [vmem:[%s1279_s0 + $0xb8] sm:$0xff] }
   0xf   :  { %1033 = vmatpush.bf16.msra.mxu2 %v828_v3  ;;  %1034 = vmatpush.bf16.msra.mxu3 %v828_v3  ;;  %v823_v39 = vld [vmem:[%s1279_s0 + $0xf8] sm:$0xff] }
  0x12   :  { %335 = vmatpush.bf16.msra.mxu0 %v827_v4  ;;  %1035 = vmatpush.bf16.msra.mxu1 %v827_v4 }
  0x13   :  { %1036 = vmatpush.bf16.msra.mxu2 %v827_v4  ;;  %1037 = vmatpush.bf16.msra.mxu3 %v827_v4 }
  0x16   :  { %336 = vmatpush.bf16.msra.mxu0 %v826_v5  ;;  %1038 = vmatpush.bf16.msra.mxu1 %v826_v5 }
  0x17   :  { %1039 = vmatpush.bf16.msra.mxu2 %v826_v5  ;;  %1040 = vmatpush.bf16.msra.mxu3 %v826_v5 }
  0x1a   :  { %337 = vmatpush.bf16.msra.mxu0 %v825_v6  ;;  %1041 = vmatpush.bf16.msra.mxu1 %v825_v6 }
  0x1b   :  { %1042 = vmatpush.bf16.msra.mxu2 %v825_v6  ;;  %1043 = vmatpush.bf16.msra.mxu3 %v825_v6 }
  0x1e   :  { %338 = vmatpush.bf16.msra.mxu0 %v824_v7  ;;  %1044 = vmatpush.bf16.msra.mxu1 %v824_v7 }
  0x1f   :  { %1045 = vmatpush.bf16.msra.mxu2 %v824_v7  ;;  %1046 = vmatpush.bf16.msra.mxu3 %v824_v7 }
  0x21   :  { %339 = vmatmul.bf16.vlgmr.msra.gmra.mxu0 %v792_v8  ;;  %379 = vmatmul.bf16.vlgmr.msra.gmra.mxu1 %v800_v9 }
  0x22   :  { %419 = vmatmul.bf16.vlgmr.msra.gmra.mxu2 %v808_v10  ;;  %459 = vmatmul.bf16.vlgmr.msra.gmra.mxu3 %v816_v11 }
  0x31   :  { %344 = vmatmul.bf16.gmra.mxu0 %v793_v12  ;;  %384 = vmatmul.bf16.gmra.mxu1 %v801_v13 }
  0x32   :  { %424 = vmatmul.bf16.gmra.mxu2 %v809_v14  ;;  %464 = vmatmul.bf16.gmra.mxu3 %v817_v15 }
  0x41   :  { %349 = vmatmul.bf16.gmra.mxu0 %v794_v16  ;;  %389 = vmatmul.bf16.gmra.mxu1 %v802_v17 }
  0x42   :  { %429 = vmatmul.bf16.gmra.mxu2 %v810_v18  ;;  %469 = vmatmul.bf16.gmra.mxu3 %v818_v19 }
  0x51   :  { %354 = vmatmul.bf16.gmra.mxu0 %v795_v20  ;;  %394 = vmatmul.bf16.gmra.mxu1 %v803_v21 }
  0x52   :  { %434 = vmatmul.bf16.gmra.mxu2 %v811_v22  ;;  %474 = vmatmul.bf16.gmra.mxu3 %v819_v23 }
  0x61   :  { %359 = vmatmul.bf16.gmra.mxu0 %v796_v24  ;;  %399 = vmatmul.bf16.gmra.mxu1 %v804_v25 }
  0x62   :  { %439 = vmatmul.bf16.gmra.mxu2 %v812_v26  ;;  %479 = vmatmul.bf16.gmra.mxu3 %v820_v27 }
  0x71   :  { %364 = vmatmul.bf16.gmra.mxu0 %v797_v28  ;;  %404 = vmatmul.bf16.gmra.mxu1 %v805_v29 }
  0x72   :  { %444 = vmatmul.bf16.gmra.mxu2 %v813_v30  ;;  %484 = vmatmul.bf16.gmra.mxu3 %v821_v31 }
  0x81   :  { %369 = vmatmul.bf16.gmra.mxu0 %v798_v32  ;;  %409 = vmatmul.bf16.gmra.mxu1 %v806_v33 }
  0x82   :  { %449 = vmatmul.bf16.gmra.mxu2 %v814_v34  ;;  %489 = vmatmul.bf16.gmra.mxu3 %v822_v35 }
  0x91   :  { %374 = vmatmul.bf16.gmra.mxu0 %v799_v36  ;;  %414 = vmatmul.bf16.gmra.mxu1 %v807_v37 }
  0x92   :  { %454 = vmatmul.bf16.gmra.mxu2 %v815_v38  ;;  %494 = vmatmul.bf16.gmra.mxu3 %v823_v39 }
  0x9e   :  { %v340_v40 = vpop.f32.mrf.mxu0  ;;  %v380_v41 = vpop.f32.mrf.mxu1 }
  0xa5   :  { %v420_v42 = vpop.f32.mrf.mxu2  ;;  %v460_v43 = vpop.f32.mrf.mxu3 }
  0xa6   :  { %v342_v44 = vpop.f32.mrf.mxu0  ;;  %v382_v45 = vpop.f32.mrf.mxu1 }
  0xa7   :  { %v835_v46 = vpack.c.bf16 %v342_v44, %v340_v40  ;;  %v875_v47 = vpack.c.bf16 %v382_v45, %v380_v41 }
  0xa9   :  { %836 = vst [vmem:[%s1280_s2] sm:$0xff] %v835_v46  }
  0xaa   :  { %999 = vst [vmem:[%s1280_s2 + $0x40] sm:$0xff] %v875_v47  }
  0xad   :  { %v422_v48 = vpop.f32.mrf.mxu2  ;;  %v462_v49 = vpop.f32.mrf.mxu3 }
  0xae   :  { %v915_v50 = vpack.c.bf16 %v422_v48, %v420_v42  ;;  %v955_v51 = vpack.c.bf16 %v462_v49, %v460_v43  ;;  %v345_v52 = vpop.f32.mrf.mxu0  ;;  %v385_v53 = vpop.f32.mrf.mxu1 }
  0xb0   :  { %1007 = vst [vmem:[%s1280_s2 + $0x80] sm:$0xff] %v915_v50  }
  0xb1   :  { %1015 = vst [vmem:[%s1280_s2 + $0xc0] sm:$0xff] %v955_v51  }
  0xb5   :  { %v425_v54 = vpop.f32.mrf.mxu2  ;;  %v465_v55 = vpop.f32.mrf.mxu3 }
  0xb6   :  { %v347_v56 = vpop.f32.mrf.mxu0  ;;  %v387_v57 = vpop.f32.mrf.mxu1 }
  0xb7   :  { %v840_v58 = vpack.c.bf16 %v347_v56, %v345_v52  ;;  %v880_v59 = vpack.c.bf16 %v387_v57, %v385_v53 }
  0xb9   :  { %992 = vst [vmem:[%s1280_s2 + $0x8] sm:$0xff] %v840_v58  }
  0xba   :  { %1000 = vst [vmem:[%s1280_s2 + $0x48] sm:$0xff] %v880_v59  }
  0xbd   :  { %v427_v60 = vpop.f32.mrf.mxu2  ;;  %v467_v61 = vpop.f32.mrf.mxu3 }
  0xbe   :  { %v920_v62 = vpack.c.bf16 %v427_v60, %v425_v54  ;;  %v960_v63 = vpack.c.bf16 %v467_v61, %v465_v55  ;;  %v350_v0 = vpop.f32.mrf.mxu0  ;;  %v390_v1 = vpop.f32.mrf.mxu1 }
  0xc0   :  { %1008 = vst [vmem:[%s1280_s2 + $0x88] sm:$0xff] %v920_v62  }
  0xc1   :  { %1016 = vst [vmem:[%s1280_s2 + $0xc8] sm:$0xff] %v960_v63  }
  0xc5   :  { %v430_v2 = vpop.f32.mrf.mxu2  ;;  %v470_v3 = vpop.f32.mrf.mxu3 }
  0xc6   :  { %v352_v4 = vpop.f32.mrf.mxu0  ;;  %v392_v5 = vpop.f32.mrf.mxu1 }
  0xc7   :  { %v845_v6 = vpack.c.bf16 %v352_v4, %v350_v0  ;;  %v885_v7 = vpack.c.bf16 %v392_v5, %v390_v1 }
  0xc9   :  { %993 = vst [vmem:[%s1280_s2 + $0x10] sm:$0xff] %v845_v6  }
  0xca   :  { %1001 = vst [vmem:[%s1280_s2 + $0x50] sm:$0xff] %v885_v7  }
  0xcd   :  { %v432_v8 = vpop.f32.mrf.mxu2  ;;  %v472_v9 = vpop.f32.mrf.mxu3 }
  0xce   :  { %v925_v10 = vpack.c.bf16 %v432_v8, %v430_v2  ;;  %v965_v11 = vpack.c.bf16 %v472_v9, %v470_v3  ;;  %v355_v12 = vpop.f32.mrf.mxu0  ;;  %v395_v13 = vpop.f32.mrf.mxu1 }
  0xd0   :  { %1009 = vst [vmem:[%s1280_s2 + $0x90] sm:$0xff] %v925_v10  }
  0xd1   :  { %1017 = vst [vmem:[%s1280_s2 + $0xd0] sm:$0xff] %v965_v11  }
  0xd5   :  { %v435_v14 = vpop.f32.mrf.mxu2  ;;  %v475_v15 = vpop.f32.mrf.mxu3 }
  0xd6   :  { %v357_v16 = vpop.f32.mrf.mxu0  ;;  %v397_v17 = vpop.f32.mrf.mxu1 }
  0xd7   :  { %v850_v18 = vpack.c.bf16 %v357_v16, %v355_v12  ;;  %v890_v19 = vpack.c.bf16 %v397_v17, %v395_v13 }
  0xd9   :  { %994 = vst [vmem:[%s1280_s2 + $0x18] sm:$0xff] %v850_v18  }
  0xda   :  { %1002 = vst [vmem:[%s1280_s2 + $0x58] sm:$0xff] %v890_v19  }
  0xdd   :  { %v437_v20 = vpop.f32.mrf.mxu2  ;;  %v477_v21 = vpop.f32.mrf.mxu3 }
  0xde   :  { %v930_v22 = vpack.c.bf16 %v437_v20, %v435_v14  ;;  %v970_v23 = vpack.c.bf16 %v477_v21, %v475_v15  ;;  %v360_v24 = vpop.f32.mrf.mxu0  ;;  %v400_v25 = vpop.f32.mrf.mxu1 }
  0xe0   :  { %1010 = vst [vmem:[%s1280_s2 + $0x98] sm:$0xff] %v930_v22  }
  0xe1   :  { %1018 = vst [vmem:[%s1280_s2 + $0xd8] sm:$0xff] %v970_v23  }
  0xe5   :  { %v440_v26 = vpop.f32.mrf.mxu2  ;;  %v480_v27 = vpop.f32.mrf.mxu3 }
  0xe6   :  { %v362_v28 = vpop.f32.mrf.mxu0  ;;  %v402_v29 = vpop.f32.mrf.mxu1 }
  0xe7   :  { %v855_v30 = vpack.c.bf16 %v362_v28, %v360_v24  ;;  %v895_v31 = vpack.c.bf16 %v402_v29, %v400_v25 }
  0xe9   :  { %995 = vst [vmem:[%s1280_s2 + $0x20] sm:$0xff] %v855_v30  }
  0xea   :  { %1003 = vst [vmem:[%s1280_s2 + $0x60] sm:$0xff] %v895_v31  }
  0xed   :  { %v442_v32 = vpop.f32.mrf.mxu2  ;;  %v482_v33 = vpop.f32.mrf.mxu3 }
  0xee   :  { %v935_v34 = vpack.c.bf16 %v442_v32, %v440_v26  ;;  %v975_v35 = vpack.c.bf16 %v482_v33, %v480_v27  ;;  %v365_v36 = vpop.f32.mrf.mxu0  ;;  %v405_v37 = vpop.f32.mrf.mxu1 }
  0xf0   :  { %1011 = vst [vmem:[%s1280_s2 + $0xa0] sm:$0xff] %v935_v34  }
  0xf1   :  { %1019 = vst [vmem:[%s1280_s2 + $0xe0] sm:$0xff] %v975_v35  }
  0xf5   :  { %v445_v38 = vpop.f32.mrf.mxu2  ;;  %v485_v39 = vpop.f32.mrf.mxu3 }
  0xf6   :  { %v367_v40 = vpop.f32.mrf.mxu0  ;;  %v407_v41 = vpop.f32.mrf.mxu1 }
  0xf7   :  { %v860_v42 = vpack.c.bf16 %v367_v40, %v365_v36  ;;  %v900_v43 = vpack.c.bf16 %v407_v41, %v405_v37 }
  0xf9   :  { %996 = vst [vmem:[%s1280_s2 + $0x28] sm:$0xff] %v860_v42  }
  0xfa   :  { %1004 = vst [vmem:[%s1280_s2 + $0x68] sm:$0xff] %v900_v43  }
  0xfd   :  { %v447_v44 = vpop.f32.mrf.mxu2  ;;  %v487_v45 = vpop.f32.mrf.mxu3 }
  0xfe   :  { %v940_v46 = vpack.c.bf16 %v447_v44, %v445_v38  ;;  %v980_v47 = vpack.c.bf16 %v487_v45, %v485_v39  ;;  %v370_v48 = vpop.f32.mrf.mxu0  ;;  %v410_v49 = vpop.f32.mrf.mxu1 }
 0x100   :  { %1012 = vst [vmem:[%s1280_s2 + $0xa8] sm:$0xff] %v940_v46  }
 0x101   :  { %1020 = vst [vmem:[%s1280_s2 + $0xe8] sm:$0xff] %v980_v47  }
 0x105   :  { %v450_v50 = vpop.f32.mrf.mxu2  ;;  %v490_v51 = vpop.f32.mrf.mxu3 }
 0x106   :  { %v372_v52 = vpop.f32.mrf.mxu0  ;;  %v412_v53 = vpop.f32.mrf.mxu1 }
 0x107   :  { %v865_v54 = vpack.c.bf16 %v372_v52, %v370_v48  ;;  %v905_v55 = vpack.c.bf16 %v412_v53, %v410_v49 }
 0x109   :  { %997 = vst [vmem:[%s1280_s2 + $0x30] sm:$0xff] %v865_v54  }
 0x10a   :  { %1005 = vst [vmem:[%s1280_s2 + $0x70] sm:$0xff] %v905_v55  }
 0x10d   :  { %v452_v56 = vpop.f32.mrf.mxu2  ;;  %v492_v57 = vpop.f32.mrf.mxu3 }
 0x10e   :  { %v945_v58 = vpack.c.bf16 %v452_v56, %v450_v50  ;;  %v985_v59 = vpack.c.bf16 %v492_v57, %v490_v51  ;;  %v375_v60 = vpop.f32.mrf.mxu0  ;;  %v415_v61 = vpop.f32.mrf.mxu1 }
 0x110   :  { %1013 = vst [vmem:[%s1280_s2 + $0xb0] sm:$0xff] %v945_v58  }
 0x111   :  { %1021 = vst [vmem:[%s1280_s2 + $0xf0] sm:$0xff] %v985_v59  }
 0x115   :  { %v455_v62 = vpop.f32.mrf.mxu2  ;;  %v495_v63 = vpop.f32.mrf.mxu3 }
 0x116   :  { %v377_v0 = vpop.f32.mrf.mxu0  ;;  %v417_v1 = vpop.f32.mrf.mxu1 }
 0x117   :  { %v870_v2 = vpack.c.bf16 %v377_v0, %v375_v60  ;;  %v910_v3 = vpack.c.bf16 %v417_v1, %v415_v61 }
 0x119   :  { %998 = vst [vmem:[%s1280_s2 + $0x38] sm:$0xff] %v870_v2  }
 0x11a   :  { %1006 = vst [vmem:[%s1280_s2 + $0x78] sm:$0xff] %v910_v3  }
 0x11d   :  { %v457_v4 = vpop.f32.mrf.mxu2  ;;  %v497_v5 = vpop.f32.mrf.mxu3 }
 0x11e   :  { %v950_v6 = vpack.c.bf16 %v457_v4, %v455_v62  ;;  %v990_v7 = vpack.c.bf16 %v497_v5, %v495_v63 }
 0x120   :  { %1014 = vst [vmem:[%s1280_s2 + $0xb8] sm:$0xff] %v950_v6  }
 0x121   :  { %1022 = vst [vmem:[%s1280_s2 + $0xf8] sm:$0xff] %v990_v7  }

// kernel: gcn_forward.3
= control target key start
LH: loop header
LB: loop body
LE: loop exit
PB: predicated region body
PF: predicated region fallthrough
CT: control target
= control target key end

     0   :  { %8 = vsyncpa [#allocation4], 0  ;;  %s2721_s0 = inlined_call_operand.hbm [shape: bf16[512,512], index: 0, kind: input, shape index: {}]   ;;  %s2722_s1 = inlined_call_operand.vmem [shape: bf16[512,128], index: 1, kind: input, shape index: {}]   ;;  %s2723_s2 = inlined_call_operand.vmem [shape: f32[1,128], index: 2, kind: input, shape index: {}]   ;;  %s2724_s3 = inlined_call_operand.vmem [shape: bf16[512,128], index: 3, kind: output, shape index: {}]  }
   0x1   :  { %10 = vsyncpa [#allocation4 + $0x1], 0  ;;  %s2347_s12 = smov 0   ;;  %s2349_s13 = smov 0  }
   0x2   :  { %s2351_s14 = smov 0   ;;  %s2353_s15 = smov 0  }
   0x3   :  { %s2355_s16 = smov 0   ;;  %s2357_s17 = smov 0  }
   0x4 LB: > { %s1594_s18 = sadd.s32 4294967295, %s2323_s17   ;;  %s28_s19 = sadd.s32 1, %s2319_s16  ;;  %s2323_s17 = sphi %s2357_s17, %s16_s17   ;;  %s2319_s16 = sphi %s2355_s16, %s2732_s16   ;;  %s2315_s15 = sphi %s2353_s15, %s2731_s15   ;;  %s2311_s14 = sphi %s2351_s14, %s2730_s14   ;;  %s2307_s13 = sphi %s2349_s13, %s2729_s13   ;;  %s2303_s12 = sphi %s2347_s12, %s2728_s12  }
   0x5   : > { %p30_p0 = scmp.ge.s32.totalorder %s28_s19, 2  ;;  %s37_s20 = sadd.s32 1, %s2311_s14 }
   0x6   : > { %p44_p1 = scmp.ne.s32.totalorder %s2311_s14, %s2307_s13  ;;  %p45_p2 = scmp.eq.s32.totalorder %s2323_s17, 0 }
   0x7   : > { %s2734_s19 = smov (%p30_p0, %s28_s19), 0  ;;  %p50_p4 = scmp.ne.s32.totalorder %s2307_s13, %s2303_s12 }
   0x8   : > { %p2383_p3 = por %p45_p2, %p44_p1  ;;  %s32_s22 = ssub.s32 %s2319_s16, %s2734_s19 }
   0x9   : > { %p51_p5 = scmp.eq.s32.totalorder %s1594_s18, 0  ;;  %p35_p6 = scmp.eq.s32.totalorder %s32_s22, 0 }
   0xa   : > { %p2191_p8 = scmp.lt.s32.totalorder %s2323_s17, 2  ;;  %s148_s25 = sand.u32 1, %s2311_s14  }
   0xb   : > { %p2390_p7 = por %p51_p5, %p50_p4  ;;  %s1993_s26 = sshll.u32 %s2319_s16, 9 }
   0xc   : > { %s2396_s24 = scalar_select %p35_p6, %s2311_s14, %s37_s20  }
   0xd   : > { %s1598_s27 = sshll.u32 %s148_s25, 9  ;;  %s160_s30 = scalar_lea.hbm %s2721_s0, %s1993_s26 }
   0xe   : > { %s161_s4 = sshll.u32 %s160_s30, 4  ;;  %s152_s5 = scalar_lea.vmem [#allocation3], %s1598_s27  ;;  %s162_s4 = int_to_ptr.hbm [resolvable:$true] %s161_s4 }
   0xf   : > { %s163_s6 = sshll.u32 %s152_s5, 4  ;;  %p2188_p9 = pnand %p2191_p8, %p2383_p3  ;;  %s164_s6 = int_to_ptr.vmem [resolvable:$true] %s163_s6 }
  0x10   : > { %p1602_p10 = scmp.ge.s32.totalorder %s2323_s17, 1  ;;  %p171_p11 = scmp.lt.s32.totalorder %s2323_s17, 3 }
  0x11   : > { %s149_s7 = scalar_lea.sflag [#allocation4], %s148_s25  ;;  %s2325_s8 = smov 256  }
  0x12   : > { %s2326_s9 = smov 16   ;;  %p172_p12 = pnand %p1602_p10, %p171_p11 }
  0x13   : > { %2190 = dma.hbm_to_vmem [thread:$0]  (!%p2188_p9), %s162_s4, 8192, %s164_s6, %s149_s7, %s2325_s8, %s2325_s8, %s2326_s9  }
  0x14   : > { %175 = sbr.rel (%p172_p12) target bundleno = 451 (0x1c3), region = 32  ;;  %s177_s10 = sand.u32 (!%p172_p12), 1, %s2307_s13  }
  0x15   : > { %s1603_s11 = sshll.u32 (!%p172_p12), %s177_s10, 9  ;;  %s178_s12 = scalar_lea.sflag (!%p172_p12), [#allocation4], %s177_s10 }
  0x16   : > { %s2408_s18 = scalar_lea.vmem (!%p172_p12), [#allocation3], %s1603_s11 }
  0x19   : > { %2298 = dma.done.wait (%p2390_p7), %s178_s12, 8192  }
  0x1a   : > { %2300 = vsyncadd (%p2390_p7), %s178_s12, 4294959104  ;;  %v2001_v0 = vld [vmem:[%s2722_s1 + $0x38] sm:$0xff]  ;;  %v2000_v4 = vld [vmem:[%s2722_s1 + $0x30] sm:$0xff]  ;;  %s1604_s29 = sshll.u32 %s2315_s15, 5 }
  0x1b   : > { %v2009_v1 = vld [vmem:[%s2722_s1 + $0x78] sm:$0xff]  ;;  %926 = vmatpush.bf16.msra.mxu0 %v2001_v0  ;;  %v2008_v5 = vld [vmem:[%s2722_s1 + $0x70] sm:$0xff]  ;;  %v1999_v8 = vld [vmem:[%s2722_s1 + $0x28] sm:$0xff]  ;;  %p2583_p13 = scmp.lt.s32.totalorder %s1604_s29, 63 }
  0x1c   : > { %v2017_v2 = vld [vmem:[%s2722_s1 + $0xb8] sm:$0xff]  ;;  %1015 = vmatpush.bf16.msra.mxu1 %v2009_v1  ;;  %v2016_v6 = vld [vmem:[%s2722_s1 + $0xb0] sm:$0xff]  ;;  %v2007_v9 = vld [vmem:[%s2722_s1 + $0x68] sm:$0xff] }
  0x1d   : > { %v2025_v3 = vld [vmem:[%s2722_s1 + $0xf8] sm:$0xff]  ;;  %1104 = vmatpush.bf16.msra.mxu2 %v2017_v2  ;;  %v2024_v7 = vld [vmem:[%s2722_s1 + $0xf0] sm:$0xff]  ;;  %v2015_v10 = vld [vmem:[%s2722_s1 + $0xa8] sm:$0xff]  ;;  %s2736_s29 = smov (!%p2583_p13, %s1604_s29), 63 }
  0x1e   : > { %1193 = vmatpush.bf16.msra.mxu3 %v2025_v3  ;;  %v2023_v11 = vld [vmem:[%s2722_s1 + $0xe8] sm:$0xff]  ;;  %v1998_v12 = vld [vmem:[%s2722_s1 + $0x20] sm:$0xff]  ;;  %v1997_v16 = vld [vmem:[%s2722_s1 + $0x18] sm:$0xff]  ;;  %s1605_s15 = sshll.u32 %s2736_s29, 2 }
  0x1f   : > { %927 = vmatpush.bf16.msra.mxu0 %v2000_v4  ;;  %v2006_v13 = vld [vmem:[%s2722_s1 + $0x60] sm:$0xff]  ;;  %v2005_v17 = vld [vmem:[%s2722_s1 + $0x58] sm:$0xff]  ;;  %v1996_v20 = vld [vmem:[%s2722_s1 + $0x10] sm:$0xff]  ;;  %s2607_s7 = scalar_lea.vmem %s2724_s3, %s1605_s15 }
  0x20   : > { %1016 = vmatpush.bf16.msra.mxu1 %v2008_v5  ;;  %v2014_v14 = vld [vmem:[%s2722_s1 + $0xa0] sm:$0xff]  ;;  %v2013_v18 = vld [vmem:[%s2722_s1 + $0x98] sm:$0xff]  ;;  %v2004_v21 = vld [vmem:[%s2722_s1 + $0x50] sm:$0xff] }
  0x21   : > { %1105 = vmatpush.bf16.msra.mxu2 %v2016_v6  ;;  %v2022_v15 = vld [vmem:[%s2722_s1 + $0xe0] sm:$0xff]  ;;  %v2021_v19 = vld [vmem:[%s2722_s1 + $0xd8] sm:$0xff]  ;;  %v2012_v22 = vld [vmem:[%s2722_s1 + $0x90] sm:$0xff] }
  0x22   : > { %1194 = vmatpush.bf16.msra.mxu3 %v2024_v7  ;;  %v2020_v23 = vld [vmem:[%s2722_s1 + $0xd0] sm:$0xff]  ;;  %v1995_v24 = vld [vmem:[%s2722_s1 + $0x8] sm:$0xff]  ;;  %v1994_v28 = vld [vmem:[%s2722_s1] sm:$0xff] }
  0x23   : > { %928 = vmatpush.bf16.msra.mxu0 %v1999_v8  ;;  %v2003_v25 = vld [vmem:[%s2722_s1 + $0x48] sm:$0xff]  ;;  %v2002_v29 = vld [vmem:[%s2722_s1 + $0x40] sm:$0xff]  ;;  %v2028_v33 = vld [vmem:[%s2408_s18 + $0xc] sm:$0xf0] }
  0x24   : > { %1017 = vmatpush.bf16.msra.mxu1 %v2007_v9  ;;  %v2011_v26 = vld [vmem:[%s2722_s1 + $0x88] sm:$0xff]  ;;  %v2010_v30 = vld [vmem:[%s2722_s1 + $0x80] sm:$0xff]  ;;  %v1610_v35 = vld [vmem:[%s2408_s18 + $0x10] sm:$0xf0] }
  0x25   : > { %1106 = vmatpush.bf16.msra.mxu2 %v2015_v10  ;;  %v2019_v27 = vld [vmem:[%s2722_s1 + $0xc8] sm:$0xff]  ;;  %v2018_v31 = vld [vmem:[%s2722_s1 + $0xc0] sm:$0xff]  ;;  %v2029_v37 = vld [vmem:[%s2408_s18 + $0x14] sm:$0xf0] }
  0x26   : > { %1195 = vmatpush.bf16.msra.mxu3 %v2023_v11  ;;  %v1608_v32 = vld [vmem:[%s2408_s18] sm:$0xf]  ;;  %v2026_v34 = vld [vmem:[%s2408_s18 + $0x4] sm:$0xf]  ;;  %v1616_v36 = vld [vmem:[%s2408_s18 + $0x8] sm:$0xf] }
  0x27   : > { %929 = vmatpush.bf16.msra.mxu0 %v1998_v12  ;;  %v2027_v38 = vld [vmem:[%s2408_s18 + $0xc] sm:$0xf]  ;;  %v1618_v39 = vld [vmem:[%s2408_s18 + $0x18] sm:$0xf0]  ;;  %v1609_v40 = vor.u32 %v2028_v33, %v1608_v32  ;;  %v1613_v41 = vor.u32 %v2026_v34, %v1610_v35  ;;  %v1617_v42 = vor.u32 %v2029_v37, %v1616_v36  ;;  %v1624_v44 = vld [vmem:[%s2408_s18 + $0x20] sm:$0xf] }
  0x28   : > { %1018 = vmatpush.bf16.msra.mxu1 %v2006_v13  ;;  %v1621_v43 = vor.u32 %v2027_v38, %v1618_v39  ;;  %v2032_v45 = vld [vmem:[%s2408_s18 + $0x2c] sm:$0xf0]  ;;  %v2030_v46 = vld [vmem:[%s2408_s18 + $0x24] sm:$0xf]  ;;  %v1626_v47 = vld [vmem:[%s2408_s18 + $0x30] sm:$0xf0] }
  0x29   : > { %1107 = vmatpush.bf16.msra.mxu2 %v2014_v14  ;;  %v1632_v48 = vld [vmem:[%s2408_s18 + $0x28] sm:$0xf]  ;;  %v2033_v49 = vld [vmem:[%s2408_s18 + $0x34] sm:$0xf0]  ;;  %v2031_v50 = vld [vmem:[%s2408_s18 + $0x2c] sm:$0xf]  ;;  %v1625_v52 = vor.u32 %v2032_v45, %v1624_v44  ;;  %v1629_v53 = vor.u32 %v2030_v46, %v1626_v47 }
  0x2a   : > { %1196 = vmatpush.bf16.msra.mxu3 %v2022_v15  ;;  %v1634_v51 = vld [vmem:[%s2408_s18 + $0x38] sm:$0xf0]  ;;  %v1633_v54 = vor.u32 %v2033_v49, %v1632_v48  ;;  %v1640_v56 = vld [vmem:[%s2408_s18 + $0x40] sm:$0xf]  ;;  %v2036_v57 = vld [vmem:[%s2408_s18 + $0x4c] sm:$0xf0] }
  0x2b   : > { %930 = vmatpush.bf16.msra.mxu0 %v1997_v16  ;;  %v1637_v55 = vor.u32 %v2031_v50, %v1634_v51  ;;  %v2034_v58 = vld [vmem:[%s2408_s18 + $0x44] sm:$0xf]  ;;  %v1642_v59 = vld [vmem:[%s2408_s18 + $0x50] sm:$0xf0]  ;;  %v1648_v60 = vld [vmem:[%s2408_s18 + $0x48] sm:$0xf]  ;;  %v1641_v0 = vor.u32 %v2036_v57, %v1640_v56 }
  0x2c   : > { %1019 = vmatpush.bf16.msra.mxu1 %v2005_v17  ;;  %v2037_v61 = vld [vmem:[%s2408_s18 + $0x54] sm:$0xf0]  ;;  %v2035_v62 = vld [vmem:[%s2408_s18 + $0x4c] sm:$0xf]  ;;  %v1650_v63 = vld [vmem:[%s2408_s18 + $0x58] sm:$0xf0]  ;;  %v1645_v1 = vor.u32 %v2034_v58, %v1642_v59 }
  0x2d   : > { %1108 = vmatpush.bf16.msra.mxu2 %v2013_v18  ;;  %v1649_v2 = vor.u32 %v2037_v61, %v1648_v60  ;;  %v1653_v3 = vor.u32 %v2035_v62, %v1650_v63  ;;  %v1656_v4 = vld [vmem:[%s2408_s18 + $0x60] sm:$0xf]  ;;  %v2040_v5 = vld [vmem:[%s2408_s18 + $0x6c] sm:$0xf0]  ;;  %v2038_v6 = vld [vmem:[%s2408_s18 + $0x64] sm:$0xf] }
  0x2e   : > { %1197 = vmatpush.bf16.msra.mxu3 %v2021_v19  ;;  %v1658_v7 = vld [vmem:[%s2408_s18 + $0x70] sm:$0xf0]  ;;  %v1664_v8 = vld [vmem:[%s2408_s18 + $0x68] sm:$0xf]  ;;  %v2041_v9 = vld [vmem:[%s2408_s18 + $0x74] sm:$0xf0]  ;;  %v1657_v12 = vor.u32 %v2040_v5, %v1656_v4 }
  0x2f   : > { %931 = vmatpush.bf16.msra.mxu0 %v1996_v20  ;;  %v2039_v10 = vld [vmem:[%s2408_s18 + $0x6c] sm:$0xf]  ;;  %v1666_v11 = vld [vmem:[%s2408_s18 + $0x78] sm:$0xf0]  ;;  %v1661_v13 = vor.u32 %v2038_v6, %v1658_v7  ;;  %v1665_v14 = vor.u32 %v2041_v9, %v1664_v8  ;;  %v1672_v16 = vld [vmem:[%s2408_s18 + $0x80] sm:$0xf] }
  0x30   : > { %1020 = vmatpush.bf16.msra.mxu1 %v2004_v21  ;;  %v1669_v15 = vor.u32 %v2039_v10, %v1666_v11  ;;  %v2044_v17 = vld [vmem:[%s2408_s18 + $0x8c] sm:$0xf0]  ;;  %v2042_v18 = vld [vmem:[%s2408_s18 + $0x84] sm:$0xf]  ;;  %v1674_v19 = vld [vmem:[%s2408_s18 + $0x90] sm:$0xf0] }
  0x31   : > { %1109 = vmatpush.bf16.msra.mxu2 %v2012_v22  ;;  %v1680_v20 = vld [vmem:[%s2408_s18 + $0x88] sm:$0xf]  ;;  %v2045_v21 = vld [vmem:[%s2408_s18 + $0x94] sm:$0xf0]  ;;  %v2043_v22 = vld [vmem:[%s2408_s18 + $0x8c] sm:$0xf] }
  0x32   : > { %1198 = vmatpush.bf16.msra.mxu3 %v2020_v23  ;;  %v1682_v23 = vld [vmem:[%s2408_s18 + $0x98] sm:$0xf0]  ;;  %v1696_v32 = vld [vmem:[%s2408_s18 + $0xa8] sm:$0xf]  ;;  %v2049_v33 = vld [vmem:[%s2408_s18 + $0xb4] sm:$0xf0] }
  0x33   : > { %932 = vmatpush.bf16.msra.mxu0 %v1995_v24  ;;  %v1673_v24 = vor.u32 %v2044_v17, %v1672_v16  ;;  %v2047_v34 = vld [vmem:[%s2408_s18 + $0xac] sm:$0xf]  ;;  %v1698_v35 = vld [vmem:[%s2408_s18 + $0xb8] sm:$0xf0]  ;;  %v1697_v38 = vor.u32 %v2049_v33, %v1696_v32  ;;  %v1712_v44 = vld [vmem:[%s2408_s18 + $0xc8] sm:$0xf] }
  0x34   : > { %1021 = vmatpush.bf16.msra.mxu1 %v2003_v25  ;;  %v1677_v25 = vor.u32 %v2042_v18, %v1674_v19  ;;  %v1701_v39 = vor.u32 %v2047_v34, %v1698_v35  ;;  %v2053_v45 = vld [vmem:[%s2408_s18 + $0xd4] sm:$0xf0]  ;;  %v2051_v46 = vld [vmem:[%s2408_s18 + $0xcc] sm:$0xf]  ;;  %v1714_v47 = vld [vmem:[%s2408_s18 + $0xd8] sm:$0xf0] }
  0x35   : > { %1110 = vmatpush.bf16.msra.mxu2 %v2011_v26  ;;  %v1681_v26 = vor.u32 %v2045_v21, %v1680_v20  ;;  %v1713_v50 = vor.u32 %v2053_v45, %v1712_v44  ;;  %v1717_v51 = vor.u32 %v2051_v46, %v1714_v47  ;;  %v1728_v56 = vld [vmem:[%s2408_s18 + $0xe8] sm:$0xf]  ;;  %v2057_v57 = vld [vmem:[%s2408_s18 + $0xf4] sm:$0xf0]  ;;  %v2055_v58 = vld [vmem:[%s2408_s18 + $0xec] sm:$0xf] }
  0x36   : > { %1199 = vmatpush.bf16.msra.mxu3 %v2019_v27  ;;  %v1685_v27 = vor.u32 %v2043_v22, %v1682_v23  ;;  %v1730_v59 = vld [vmem:[%s2408_s18 + $0xf8] sm:$0xf0]  ;;  %v1729_v62 = vor.u32 %v2057_v57, %v1728_v56  ;;  %v1744_v4 = vld [vmem:[%s2408_s18 + $0x108] sm:$0xf]  ;;  %v2061_v5 = vld [vmem:[%s2408_s18 + $0x114] sm:$0xf0] }
  0x37   : > { %933 = vmatpush.bf16.msra.mxu0 %v1994_v28  ;;  %v1688_v28 = vld [vmem:[%s2408_s18 + $0xa0] sm:$0xf]  ;;  %v1733_v63 = vor.u32 %v2055_v58, %v1730_v59  ;;  %v2059_v6 = vld [vmem:[%s2408_s18 + $0x10c] sm:$0xf]  ;;  %v1746_v7 = vld [vmem:[%s2408_s18 + $0x118] sm:$0xf0] }
  0x38   : > { %1022 = vmatpush.bf16.msra.mxu1 %v2002_v29  ;;  %v2048_v29 = vld [vmem:[%s2408_s18 + $0xac] sm:$0xf0]  ;;  %v1752_v20 = vld [vmem:[%s2408_s18 + $0x120] sm:$0xf]  ;;  %v2062_v22 = vld [vmem:[%s2408_s18 + $0x124] sm:$0xf] }
  0x39   : > { %1111 = vmatpush.bf16.msra.mxu2 %v2010_v30  ;;  %v2046_v30 = vld [vmem:[%s2408_s18 + $0xa4] sm:$0xf]  ;;  %v1689_v36 = vor.u32 %v2048_v29, %v1688_v28  ;;  %v2064_v21 = vld [vmem:[%s2408_s18 + $0x12c] sm:$0xf0]  ;;  %v1754_v23 = vld [vmem:[%s2408_s18 + $0x130] sm:$0xf0] }
  0x3a   : > { %1200 = vmatpush.bf16.msra.mxu3 %v2018_v31  ;;  %934 = vmatmul.bf16.vlgmr.msra.gmra.mxu0 %v1609_v40  ;;  %v1690_v31 = vld [vmem:[%s2408_s18 + $0xb0] sm:$0xf0]  ;;  %v1704_v40 = vld [vmem:[%s2408_s18 + $0xc0] sm:$0xf]  ;;  %v1753_v33 = vor.u32 %v2064_v21, %v1752_v20  ;;  %v1757_v34 = vor.u32 %v2062_v22, %v1754_v23  ;;  %v1776_v56 = vld [vmem:[%s2408_s18 + $0x148] sm:$0xf] }
  0x3b   : > { %1023 = vmatmul.bf16.vlgmr.msra.gmra.mxu1 %v1613_v41  ;;  %v1693_v37 = vor.u32 %v2046_v30, %v1690_v31  ;;  %v2052_v41 = vld [vmem:[%s2408_s18 + $0xcc] sm:$0xf0]  ;;  %v2598_v29 = vld [vmem:[%s2723_s2] ss:$0 sm:$0xff]  ;;  %v2069_v57 = vld [vmem:[%s2408_s18 + $0x154] sm:$0xf0] }
  0x3c   : > { %1112 = vmatmul.bf16.vlgmr.msra.gmra.mxu2 %v1617_v42  ;;  %v2050_v42 = vld [vmem:[%s2408_s18 + $0xc4] sm:$0xf]  ;;  %v1705_v48 = vor.u32 %v2052_v41, %v1704_v40  ;;  %v2067_v58 = vld [vmem:[%s2408_s18 + $0x14c] sm:$0xf]  ;;  %v1778_v59 = vld [vmem:[%s2408_s18 + $0x158] sm:$0xf0] }
  0x3d   : > { %1201 = vmatmul.bf16.vlgmr.msra.gmra.mxu3 %v1621_v43  ;;  %v1706_v43 = vld [vmem:[%s2408_s18 + $0xd0] sm:$0xf0]  ;;  %v2072_v20 = vld [vmem:[%s2408_s18 + $0x16c] sm:$0xf0]  ;;  %v2070_v21 = vld [vmem:[%s2408_s18 + $0x164] sm:$0xf] }
  0x3e   : > { %v1709_v49 = vor.u32 %v2050_v42, %v1706_v43  ;;  %v1786_v22 = vld [vmem:[%s2408_s18 + $0x170] sm:$0xf0]  ;;  %v1792_v23 = vld [vmem:[%s2408_s18 + $0x168] sm:$0xf] }
  0x4a   : > { %939 = vmatmul.bf16.gmra.mxu0 %v1625_v52  ;;  %v1720_v52 = vld [vmem:[%s2408_s18 + $0xe0] sm:$0xf] }
  0x4b   : > { %1028 = vmatmul.bf16.gmra.mxu1 %v1629_v53  ;;  %v2056_v53 = vld [vmem:[%s2408_s18 + $0xec] sm:$0xf0] }
  0x4c   : > { %1117 = vmatmul.bf16.gmra.mxu2 %v1633_v54  ;;  %v2054_v54 = vld [vmem:[%s2408_s18 + $0xe4] sm:$0xf]  ;;  %v1721_v60 = vor.u32 %v2056_v53, %v1720_v52  ;;  %v1768_v52 = vld [vmem:[%s2408_s18 + $0x140] sm:$0xf]  ;;  %v2068_v53 = vld [vmem:[%s2408_s18 + $0x14c] sm:$0xf0] }
  0x4d   : > { %1206 = vmatmul.bf16.gmra.mxu3 %v1637_v55  ;;  %v1722_v55 = vld [vmem:[%s2408_s18 + $0xf0] sm:$0xf0] }
  0x4e   : > { %v1725_v61 = vor.u32 %v2054_v54, %v1722_v55  ;;  %v2066_v54 = vld [vmem:[%s2408_s18 + $0x144] sm:$0xf]  ;;  %v1770_v55 = vld [vmem:[%s2408_s18 + $0x150] sm:$0xf0] }
  0x5a   : > { %944 = vmatmul.bf16.gmra.mxu0 %v1641_v0  ;;  %v1736_v0 = vld [vmem:[%s2408_s18 + $0x100] sm:$0xf] }
  0x5b   : > { %1033 = vmatmul.bf16.gmra.mxu1 %v1645_v1  ;;  %v2060_v1 = vld [vmem:[%s2408_s18 + $0x10c] sm:$0xf0] }
  0x5c   : > { %1122 = vmatmul.bf16.gmra.mxu2 %v1649_v2  ;;  %v2058_v2 = vld [vmem:[%s2408_s18 + $0x104] sm:$0xf]  ;;  %v1737_v8 = vor.u32 %v2060_v1, %v1736_v0  ;;  %v1769_v0 = vor.u32 %v2068_v53, %v1768_v52  ;;  %v1773_v1 = vor.u32 %v2066_v54, %v1770_v55  ;;  %v2076_v52 = vld [vmem:[%s2408_s18 + $0x18c] sm:$0xf0]  ;;  %v1802_v54 = vld [vmem:[%s2408_s18 + $0x190] sm:$0xf0] }
  0x5d   : > { %1211 = vmatmul.bf16.gmra.mxu3 %v1653_v3  ;;  %v1738_v3 = vld [vmem:[%s2408_s18 + $0x110] sm:$0xf0]  ;;  %v2074_v53 = vld [vmem:[%s2408_s18 + $0x184] sm:$0xf]  ;;  %v1808_v55 = vld [vmem:[%s2408_s18 + $0x188] sm:$0xf] }
  0x5e   : > { %v1741_v9 = vor.u32 %v2058_v2, %v1738_v3 }
  0x6a   : > { %949 = vmatmul.bf16.gmra.mxu0 %v1657_v12  ;;  %v1745_v12 = vor.u32 %v2061_v5, %v1744_v4  ;;  %v1777_v5 = vor.u32 %v2069_v57, %v1776_v56  ;;  %v2077_v56 = vld [vmem:[%s2408_s18 + $0x194] sm:$0xf0]  ;;  %v2075_v57 = vld [vmem:[%s2408_s18 + $0x18c] sm:$0xf] }
  0x6b   : > { %1038 = vmatmul.bf16.gmra.mxu1 %v1661_v13  ;;  %v1749_v13 = vor.u32 %v2059_v6, %v1746_v7  ;;  %v1781_v6 = vor.u32 %v2067_v58, %v1778_v59  ;;  %v1810_v58 = vld [vmem:[%s2408_s18 + $0x198] sm:$0xf0] }
  0x6c   : > { %1127 = vmatmul.bf16.gmra.mxu2 %v1665_v14 }
  0x6d   : > { %1216 = vmatmul.bf16.gmra.mxu3 %v1669_v15 }
  0x7a   : > { %954 = vmatmul.bf16.gmra.mxu0 %v1673_v24  ;;  %v1760_v24 = vld [vmem:[%s2408_s18 + $0x128] sm:$0xf] }
  0x7b   : > { %1043 = vmatmul.bf16.gmra.mxu1 %v1677_v25  ;;  %v2065_v25 = vld [vmem:[%s2408_s18 + $0x134] sm:$0xf0] }
  0x7c   : > { %1132 = vmatmul.bf16.gmra.mxu2 %v1681_v26  ;;  %v2063_v26 = vld [vmem:[%s2408_s18 + $0x12c] sm:$0xf] }
  0x7d   : > { %1221 = vmatmul.bf16.gmra.mxu3 %v1685_v27  ;;  %v1762_v27 = vld [vmem:[%s2408_s18 + $0x138] sm:$0xf0] }
  0x8a   : > { %959 = vmatmul.bf16.gmra.mxu0 %v1689_v36 }
  0x8b   : > { %1048 = vmatmul.bf16.gmra.mxu1 %v1693_v37 }
  0x8c   : > { %1137 = vmatmul.bf16.gmra.mxu2 %v1697_v38  ;;  %v1761_v38 = vor.u32 %v2065_v25, %v1760_v24  ;;  %v2073_v24 = vld [vmem:[%s2408_s18 + $0x174] sm:$0xf0]  ;;  %v2071_v25 = vld [vmem:[%s2408_s18 + $0x16c] sm:$0xf] }
  0x8d   : > { %1226 = vmatmul.bf16.gmra.mxu3 %v1701_v39  ;;  %v1765_v39 = vor.u32 %v2063_v26, %v1762_v27  ;;  %v1794_v26 = vld [vmem:[%s2408_s18 + $0x178] sm:$0xf0] }
  0x9a   : > { %964 = vmatmul.bf16.gmra.mxu0 %v1705_v48 }
  0x9b   : > { %1053 = vmatmul.bf16.gmra.mxu1 %v1709_v49 }
  0x9c   : > { %1142 = vmatmul.bf16.gmra.mxu2 %v1713_v50 }
  0x9d   : > { %1231 = vmatmul.bf16.gmra.mxu3 %v1717_v51 }
  0xaa   : > { %969 = vmatmul.bf16.gmra.mxu0 %v1721_v60 }
  0xab   : > { %1058 = vmatmul.bf16.gmra.mxu1 %v1725_v61 }
  0xac   : > { %1147 = vmatmul.bf16.gmra.mxu2 %v1729_v62 }
  0xad   : > { %1236 = vmatmul.bf16.gmra.mxu3 %v1733_v63 }
  0xb7   : > { %v935_v10 = vpop.f32.mrf.mxu0 }
  0xb8   : > { %v1024_v11 = vpop.f32.mrf.mxu1 }
  0xb9   : > { %v1025_v14 = vadd.f32 %v1024_v11, %v935_v10 }
  0xba   : > { %974 = vmatmul.bf16.gmra.mxu0 %v1737_v8 }
  0xbb   : > { %1063 = vmatmul.bf16.gmra.mxu1 %v1741_v9 }
  0xbc   : > { %1152 = vmatmul.bf16.gmra.mxu2 %v1745_v12 }
  0xbd   : > { %1241 = vmatmul.bf16.gmra.mxu3 %v1749_v13 }
  0xbf   : > { %v1113_v15 = vpop.f32.mrf.mxu2  ;;  %v937_v17 = vpop.f32.mrf.mxu0 }
  0xc0   : > { %v1202_v16 = vpop.f32.mrf.mxu3  ;;  %v1026_v18 = vpop.f32.mrf.mxu1  ;;  %v1114_v19 = vadd.f32 %v1113_v15, %v1025_v14 }
  0xc1   : > { %v1027_v30 = vadd.f32 %v1026_v18, %v937_v17 }
  0xc2   : > { %v1203_v28 = vadd.f32 %v1202_v16, %v1114_v19  ;;  %v1784_v19 = vld [vmem:[%s2408_s18 + $0x160] sm:$0xf] }
  0xc4   : > { %v1385_v40 = vadd.f32 %v2598_v29, %v1203_v28 }
  0xc6   : > { %v1417_v43 = vmax.f32 %v1385_v40, 0.0 }
  0xc7   : > { %v1115_v31 = vpop.f32.mrf.mxu2  ;;  %v940_v36 = vpop.f32.mrf.mxu0 }
  0xc8   : > { %v1204_v32 = vpop.f32.mrf.mxu3  ;;  %v1116_v35 = vadd.f32 %v1115_v31, %v1027_v30  ;;  %v1029_v37 = vpop.f32.mrf.mxu1 }
  0xc9   : > { %v1030_v45 = vadd.f32 %v1029_v37, %v940_v36  ;;  %v1793_v37 = vor.u32 %v2073_v24, %v1792_v23  ;;  %v2081_v23 = vld [vmem:[%s2408_s18 + $0x1b4] sm:$0xf0]  ;;  %v2079_v24 = vld [vmem:[%s2408_s18 + $0x1ac] sm:$0xf] }
  0xca   : > { %v1205_v41 = vadd.f32 %v1204_v32, %v1116_v35  ;;  %979 = vmatmul.bf16.gmra.mxu0 %v1753_v33  ;;  %v1785_v32 = vor.u32 %v2072_v20, %v1784_v19  ;;  %v1789_v33 = vor.u32 %v2070_v21, %v1786_v22  ;;  %v2080_v19 = vld [vmem:[%s2408_s18 + $0x1ac] sm:$0xf0]  ;;  %v2078_v20 = vld [vmem:[%s2408_s18 + $0x1a4] sm:$0xf]  ;;  %v1818_v21 = vld [vmem:[%s2408_s18 + $0x1b0] sm:$0xf0] }
  0xcb   : > { %1068 = vmatmul.bf16.gmra.mxu1 %v1757_v34  ;;  %v1824_v22 = vld [vmem:[%s2408_s18 + $0x1a8] sm:$0xf] }
  0xcc   : > { %v1386_v42 = vadd.f32 %v2598_v29, %v1205_v41  ;;  %1157 = vmatmul.bf16.gmra.mxu2 %v1761_v38  ;;  %v1797_v38 = vor.u32 %v2071_v25, %v1794_v26  ;;  %v1826_v25 = vld [vmem:[%s2408_s18 + $0x1b8] sm:$0xf0] }
  0xcd   : > { %1246 = vmatmul.bf16.gmra.mxu3 %v1765_v39 }
  0xce   : > { %v1418_v44 = vmax.f32 %v1386_v42, 0.0 }
  0xcf   : > { %v1118_v46 = vpop.f32.mrf.mxu2  ;;  %v942_v49 = vpop.f32.mrf.mxu0 }
  0xd0   : > { %v1207_v47 = vpop.f32.mrf.mxu3  ;;  %v2093_v48 = vpack.c.bf16 %v1418_v44, %v1417_v43  ;;  %v1031_v50 = vpop.f32.mrf.mxu1  ;;  %v1119_v51 = vadd.f32 %v1118_v46, %v1030_v45 }
  0xd1   : > { %v1032_v61 = vadd.f32 %v1031_v50, %v942_v49 }
  0xd2   : > { %2094 = vst [vmem:[%s2607_s7] sm:$0xff] %v2093_v48   ;;  %v1208_v60 = vadd.f32 %v1207_v47, %v1119_v51  ;;  %v1800_v51 = vld [vmem:[%s2408_s18 + $0x180] sm:$0xf] }
  0xd4   : > { %v1387_v7 = vadd.f32 %v2598_v29, %v1208_v60 }
  0xd6   : > { %v1419_v10 = vmax.f32 %v1387_v7, 0.0 }
  0xd7   : > { %v1120_v62 = vpop.f32.mrf.mxu2  ;;  %v945_v3 = vpop.f32.mrf.mxu0 }
  0xd8   : > { %v1209_v63 = vpop.f32.mrf.mxu3  ;;  %v1121_v2 = vadd.f32 %v1120_v62, %v1032_v61  ;;  %v1034_v4 = vpop.f32.mrf.mxu1 }
  0xd9   : > { %v1035_v12 = vadd.f32 %v1034_v4, %v945_v3  ;;  %v1809_v4 = vor.u32 %v2077_v56, %v1808_v55  ;;  %v2085_v55 = vld [vmem:[%s2408_s18 + $0x1d4] sm:$0xf0]  ;;  %v2083_v56 = vld [vmem:[%s2408_s18 + $0x1cc] sm:$0xf] }
  0xda   : > { %v1210_v8 = vadd.f32 %v1209_v63, %v1121_v2  ;;  %984 = vmatmul.bf16.gmra.mxu0 %v1769_v0  ;;  %v1801_v63 = vor.u32 %v2076_v52, %v1800_v51  ;;  %v1805_v0 = vor.u32 %v2074_v53, %v1802_v54  ;;  %v2084_v51 = vld [vmem:[%s2408_s18 + $0x1cc] sm:$0xf0]  ;;  %v2082_v52 = vld [vmem:[%s2408_s18 + $0x1c4] sm:$0xf]  ;;  %v1834_v53 = vld [vmem:[%s2408_s18 + $0x1d0] sm:$0xf0] }
  0xdb   : > { %1073 = vmatmul.bf16.gmra.mxu1 %v1773_v1  ;;  %v1840_v54 = vld [vmem:[%s2408_s18 + $0x1c8] sm:$0xf] }
  0xdc   : > { %v1388_v9 = vadd.f32 %v2598_v29, %v1210_v8  ;;  %1162 = vmatmul.bf16.gmra.mxu2 %v1777_v5  ;;  %v1813_v5 = vor.u32 %v2075_v57, %v1810_v58  ;;  %v1842_v57 = vld [vmem:[%s2408_s18 + $0x1d8] sm:$0xf0] }
  0xdd   : > { %1251 = vmatmul.bf16.gmra.mxu3 %v1781_v6 }
  0xde   : > { %v1420_v11 = vmax.f32 %v1388_v9, 0.0 }
  0xdf   : > { %v1123_v13 = vpop.f32.mrf.mxu2  ;;  %v947_v16 = vpop.f32.mrf.mxu0 }
  0xe0   : > { %v1212_v14 = vpop.f32.mrf.mxu3  ;;  %v2098_v15 = vpack.c.bf16 %v1420_v11, %v1419_v10  ;;  %v1036_v17 = vpop.f32.mrf.mxu1  ;;  %v1124_v18 = vadd.f32 %v1123_v13, %v1035_v12 }
  0xe1   : > { %v1037_v28 = vadd.f32 %v1036_v17, %v947_v16 }
  0xe2   : > { %2170 = vst [vmem:[%s2607_s7 + $0x8] sm:$0xff] %v2098_v15   ;;  %v1213_v27 = vadd.f32 %v1212_v14, %v1124_v18  ;;  %v1816_v18 = vld [vmem:[%s2408_s18 + $0x1a0] sm:$0xf] }
  0xe4   : > { %v1389_v39 = vadd.f32 %v2598_v29, %v1213_v27 }
  0xe6   : > { %v1421_v42 = vmax.f32 %v1389_v39, 0.0 }
  0xe7   : > { %v1125_v30 = vpop.f32.mrf.mxu2  ;;  %v950_v35 = vpop.f32.mrf.mxu0 }
  0xe8   : > { %v1214_v31 = vpop.f32.mrf.mxu3  ;;  %v1126_v34 = vadd.f32 %v1125_v30, %v1037_v28  ;;  %v1039_v36 = vpop.f32.mrf.mxu1 }
  0xe9   : > { %v1040_v44 = vadd.f32 %v1039_v36, %v950_v35  ;;  %v1825_v36 = vor.u32 %v2081_v23, %v1824_v22  ;;  %v2089_v22 = vld [vmem:[%s2408_s18 + $0x1f4] sm:$0xf0]  ;;  %v2087_v23 = vld [vmem:[%s2408_s18 + $0x1ec] sm:$0xf] }
  0xea   : > { %v1215_v40 = vadd.f32 %v1214_v31, %v1126_v34  ;;  %989 = vmatmul.bf16.gmra.mxu0 %v1785_v32  ;;  %v1817_v31 = vor.u32 %v2080_v19, %v1816_v18  ;;  %v1821_v32 = vor.u32 %v2078_v20, %v1818_v21  ;;  %v2088_v18 = vld [vmem:[%s2408_s18 + $0x1ec] sm:$0xf0]  ;;  %v2086_v19 = vld [vmem:[%s2408_s18 + $0x1e4] sm:$0xf]  ;;  %v1850_v20 = vld [vmem:[%s2408_s18 + $0x1f0] sm:$0xf0] }
  0xeb   : > { %1078 = vmatmul.bf16.gmra.mxu1 %v1789_v33  ;;  %v1856_v21 = vld [vmem:[%s2408_s18 + $0x1e8] sm:$0xf] }
  0xec   : > { %v1390_v41 = vadd.f32 %v2598_v29, %v1215_v40  ;;  %1167 = vmatmul.bf16.gmra.mxu2 %v1793_v37  ;;  %v1829_v37 = vor.u32 %v2079_v24, %v1826_v25  ;;  %v1858_v24 = vld [vmem:[%s2408_s18 + $0x1f8] sm:$0xf0] }
  0xed   : > { %1256 = vmatmul.bf16.gmra.mxu3 %v1797_v38 }
  0xee   : > { %v1422_v43 = vmax.f32 %v1390_v41, 0.0 }
  0xef   : > { %v1128_v45 = vpop.f32.mrf.mxu2  ;;  %v952_v48 = vpop.f32.mrf.mxu0 }
  0xf0   : > { %v1217_v46 = vpop.f32.mrf.mxu3  ;;  %v2103_v47 = vpack.c.bf16 %v1422_v43, %v1421_v42  ;;  %v1041_v49 = vpop.f32.mrf.mxu1  ;;  %v1129_v50 = vadd.f32 %v1128_v45, %v1040_v44 }
  0xf1   : > { %v1042_v60 = vadd.f32 %v1041_v49, %v952_v48 }
  0xf2   : > { %2171 = vst [vmem:[%s2607_s7 + $0x10] sm:$0xff] %v2103_v47   ;;  %v1218_v59 = vadd.f32 %v1217_v46, %v1129_v50  ;;  %v1832_v50 = vld [vmem:[%s2408_s18 + $0x1c0] sm:$0xf] }
  0xf4   : > { %v1391_v6 = vadd.f32 %v2598_v29, %v1218_v59 }
  0xf6   : > { %v1423_v9 = vmax.f32 %v1391_v6, 0.0 }
  0xf7   : > { %v1130_v61 = vpop.f32.mrf.mxu2  ;;  %v955_v2 = vpop.f32.mrf.mxu0 }
  0xf8   : > { %v1219_v62 = vpop.f32.mrf.mxu3  ;;  %v1131_v1 = vadd.f32 %v1130_v61, %v1042_v60  ;;  %v1044_v3 = vpop.f32.mrf.mxu1 }
  0xf9   : > { %v1045_v11 = vadd.f32 %v1044_v3, %v955_v2  ;;  %v1841_v3 = vor.u32 %v2085_v55, %v1840_v54 }
  0xfa   : > { %v1220_v7 = vadd.f32 %v1219_v62, %v1131_v1  ;;  %994 = vmatmul.bf16.gmra.mxu0 %v1801_v63  ;;  %v1833_v62 = vor.u32 %v2084_v51, %v1832_v50  ;;  %v1837_v63 = vor.u32 %v2082_v52, %v1834_v53 }
  0xfb   : > { %1083 = vmatmul.bf16.gmra.mxu1 %v1805_v0 }
  0xfc   : > { %v1392_v8 = vadd.f32 %v2598_v29, %v1220_v7  ;;  %1172 = vmatmul.bf16.gmra.mxu2 %v1809_v4  ;;  %v1845_v4 = vor.u32 %v2083_v56, %v1842_v57 }
  0xfd   : > { %1261 = vmatmul.bf16.gmra.mxu3 %v1813_v5 }
  0xfe   : > { %v1424_v10 = vmax.f32 %v1392_v8, 0.0 }
  0xff   : > { %v1133_v12 = vpop.f32.mrf.mxu2  ;;  %v957_v15 = vpop.f32.mrf.mxu0 }
 0x100   : > { %v1222_v13 = vpop.f32.mrf.mxu3  ;;  %v2108_v14 = vpack.c.bf16 %v1424_v10, %v1423_v9  ;;  %v1046_v16 = vpop.f32.mrf.mxu1  ;;  %v1134_v17 = vadd.f32 %v1133_v12, %v1045_v11 }
 0x101   : > { %v1047_v27 = vadd.f32 %v1046_v16, %v957_v15 }
 0x102   : > { %2172 = vst [vmem:[%s2607_s7 + $0x18] sm:$0xff] %v2108_v14   ;;  %v1223_v26 = vadd.f32 %v1222_v13, %v1134_v17  ;;  %v1848_v17 = vld [vmem:[%s2408_s18 + $0x1e0] sm:$0xf] }
 0x104   : > { %v1393_v38 = vadd.f32 %v2598_v29, %v1223_v26 }
 0x106   : > { %v1425_v41 = vmax.f32 %v1393_v38, 0.0 }
 0x107   : > { %v1135_v28 = vpop.f32.mrf.mxu2  ;;  %v960_v34 = vpop.f32.mrf.mxu0 }
 0x108   : > { %v1224_v30 = vpop.f32.mrf.mxu3  ;;  %v1136_v33 = vadd.f32 %v1135_v28, %v1047_v27  ;;  %v1049_v35 = vpop.f32.mrf.mxu1 }
 0x109   : > { %v1050_v43 = vadd.f32 %v1049_v35, %v960_v34  ;;  %v1857_v35 = vor.u32 %v2089_v22, %v1856_v21 }
 0x10a   : > { %v1225_v39 = vadd.f32 %v1224_v30, %v1136_v33  ;;  %999 = vmatmul.bf16.gmra.mxu0 %v1817_v31  ;;  %v1849_v30 = vor.u32 %v2088_v18, %v1848_v17  ;;  %v1853_v31 = vor.u32 %v2086_v19, %v1850_v20 }
 0x10b   : > { %1088 = vmatmul.bf16.gmra.mxu1 %v1821_v32 }
 0x10c   : > { %v1394_v40 = vadd.f32 %v2598_v29, %v1225_v39  ;;  %1177 = vmatmul.bf16.gmra.mxu2 %v1825_v36  ;;  %v1861_v36 = vor.u32 %v2087_v23, %v1858_v24 }
 0x10d   : > { %1266 = vmatmul.bf16.gmra.mxu3 %v1829_v37 }
 0x10e   : > { %v1426_v42 = vmax.f32 %v1394_v40, 0.0 }
 0x10f   : > { %v1138_v44 = vpop.f32.mrf.mxu2  ;;  %v962_v47 = vpop.f32.mrf.mxu0 }
 0x110   : > { %v1227_v45 = vpop.f32.mrf.mxu3  ;;  %v2113_v46 = vpack.c.bf16 %v1426_v42, %v1425_v41  ;;  %v1051_v48 = vpop.f32.mrf.mxu1  ;;  %v1139_v49 = vadd.f32 %v1138_v44, %v1050_v43 }
 0x111   : > { %v1052_v59 = vadd.f32 %v1051_v48, %v962_v47 }
 0x112   : > { %2173 = vst [vmem:[%s2607_s7 + $0x20] sm:$0xff] %v2113_v46   ;;  %v1228_v58 = vadd.f32 %v1227_v45, %v1139_v49 }
 0x114   : > { %v1395_v5 = vadd.f32 %v2598_v29, %v1228_v58 }
 0x116   : > { %v1427_v8 = vmax.f32 %v1395_v5, 0.0 }
 0x117   : > { %v1140_v60 = vpop.f32.mrf.mxu2  ;;  %v965_v1 = vpop.f32.mrf.mxu0 }
 0x118   : > { %v1229_v61 = vpop.f32.mrf.mxu3  ;;  %v1141_v0 = vadd.f32 %v1140_v60, %v1052_v59  ;;  %v1054_v2 = vpop.f32.mrf.mxu1 }
 0x119   : > { %v1055_v10 = vadd.f32 %v1054_v2, %v965_v1 }
 0x11a   : > { %v1230_v6 = vadd.f32 %v1229_v61, %v1141_v0  ;;  %1004 = vmatmul.bf16.gmra.mxu0 %v1833_v62 }
 0x11b   : > { %1093 = vmatmul.bf16.gmra.mxu1 %v1837_v63 }
 0x11c   : > { %v1396_v7 = vadd.f32 %v2598_v29, %v1230_v6  ;;  %1182 = vmatmul.bf16.gmra.mxu2 %v1841_v3 }
 0x11d   : > { %1271 = vmatmul.bf16.gmra.mxu3 %v1845_v4 }
 0x11e   : > { %v1428_v9 = vmax.f32 %v1396_v7, 0.0 }
 0x11f   : > { %v1143_v11 = vpop.f32.mrf.mxu2  ;;  %v967_v14 = vpop.f32.mrf.mxu0 }
 0x120   : > { %v1232_v12 = vpop.f32.mrf.mxu3  ;;  %v2118_v13 = vpack.c.bf16 %v1428_v9, %v1427_v8  ;;  %v1056_v15 = vpop.f32.mrf.mxu1  ;;  %v1144_v16 = vadd.f32 %v1143_v11, %v1055_v10 }
 0x121   : > { %v1057_v26 = vadd.f32 %v1056_v15, %v967_v14 }
 0x122   : > { %2174 = vst [vmem:[%s2607_s7 + $0x28] sm:$0xff] %v2118_v13   ;;  %v1233_v25 = vadd.f32 %v1232_v12, %v1144_v16 }
 0x124   : > { %v1397_v37 = vadd.f32 %v2598_v29, %v1233_v25 }
 0x126   : > { %v1429_v40 = vmax.f32 %v1397_v37, 0.0 }
 0x127   : > { %v1145_v27 = vpop.f32.mrf.mxu2  ;;  %v970_v33 = vpop.f32.mrf.mxu0 }
 0x128   : > { %v1234_v28 = vpop.f32.mrf.mxu3  ;;  %v1146_v32 = vadd.f32 %v1145_v27, %v1057_v26  ;;  %v1059_v34 = vpop.f32.mrf.mxu1 }
 0x129   : > { %v1060_v42 = vadd.f32 %v1059_v34, %v970_v33 }
 0x12a   : > { %v1235_v38 = vadd.f32 %v1234_v28, %v1146_v32  ;;  %1009 = vmatmul.bf16.gmra.mxu0 %v1849_v30 }
 0x12b   : > { %1098 = vmatmul.bf16.gmra.mxu1 %v1853_v31 }
 0x12c   : > { %v1398_v39 = vadd.f32 %v2598_v29, %v1235_v38  ;;  %1187 = vmatmul.bf16.gmra.mxu2 %v1857_v35 }
 0x12d   : > { %1276 = vmatmul.bf16.gmra.mxu3 %v1861_v36 }
 0x12e   : > { %v1430_v41 = vmax.f32 %v1398_v39, 0.0 }
 0x12f   : > { %v1148_v43 = vpop.f32.mrf.mxu2  ;;  %v972_v46 = vpop.f32.mrf.mxu0 }
 0x130   : > { %v1237_v44 = vpop.f32.mrf.mxu3  ;;  %v2123_v45 = vpack.c.bf16 %v1430_v41, %v1429_v40  ;;  %v1061_v47 = vpop.f32.mrf.mxu1  ;;  %v1149_v48 = vadd.f32 %v1148_v43, %v1060_v42 }
 0x131   : > { %v1062_v50 = vadd.f32 %v1061_v47, %v972_v46 }
 0x132   : > { %2175 = vst [vmem:[%s2607_s7 + $0x30] sm:$0xff] %v2123_v45   ;;  %v1238_v49 = vadd.f32 %v1237_v44, %v1149_v48 }
 0x134   : > { %v1399_v56 = vadd.f32 %v2598_v29, %v1238_v49 }
 0x136   : > { %v1431_v59 = vmax.f32 %v1399_v56, 0.0 }
 0x137   : > { %v1150_v51 = vpop.f32.mrf.mxu2  ;;  %v975_v54 = vpop.f32.mrf.mxu0 }
 0x138   : > { %v1239_v52 = vpop.f32.mrf.mxu3  ;;  %v1151_v53 = vadd.f32 %v1150_v51, %v1062_v50  ;;  %v1064_v55 = vpop.f32.mrf.mxu1 }
 0x139   : > { %v1065_v61 = vadd.f32 %v1064_v55, %v975_v54 }
 0x13a   : > { %v1240_v57 = vadd.f32 %v1239_v52, %v1151_v53 }
 0x13c   : > { %v1400_v58 = vadd.f32 %v2598_v29, %v1240_v57 }
 0x13e   : > { %v1432_v60 = vmax.f32 %v1400_v58, 0.0 }
 0x13f   : > { %v1153_v62 = vpop.f32.mrf.mxu2  ;;  %v977_v1 = vpop.f32.mrf.mxu0 }
 0x140   : > { %v1242_v63 = vpop.f32.mrf.mxu3  ;;  %v2128_v0 = vpack.c.bf16 %v1432_v60, %v1431_v59  ;;  %v1066_v2 = vpop.f32.mrf.mxu1  ;;  %v1154_v3 = vadd.f32 %v1153_v62, %v1065_v61 }
 0x141   : > { %v1067_v5 = vadd.f32 %v1066_v2, %v977_v1 }
 0x142   : > { %2176 = vst [vmem:[%s2607_s7 + $0x38] sm:$0xff] %v2128_v0   ;;  %v1243_v4 = vadd.f32 %v1242_v63, %v1154_v3 }
 0x144   : > { %v1401_v11 = vadd.f32 %v2598_v29, %v1243_v4 }
 0x146   : > { %v1433_v14 = vmax.f32 %v1401_v11, 0.0 }
 0x147   : > { %v1155_v6 = vpop.f32.mrf.mxu2  ;;  %v980_v9 = vpop.f32.mrf.mxu0 }
 0x148   : > { %v1244_v7 = vpop.f32.mrf.mxu3  ;;  %v1156_v8 = vadd.f32 %v1155_v6, %v1067_v5  ;;  %v1069_v10 = vpop.f32.mrf.mxu1 }
 0x149   : > { %v1070_v16 = vadd.f32 %v1069_v10, %v980_v9 }
 0x14a   : > { %v1245_v12 = vadd.f32 %v1244_v7, %v1156_v8 }
 0x14c   : > { %v1402_v13 = vadd.f32 %v2598_v29, %v1245_v12 }
 0x14e   : > { %v1434_v15 = vmax.f32 %v1402_v13, 0.0 }
 0x14f   : > { %v1158_v17 = vpop.f32.mrf.mxu2  ;;  %v982_v20 = vpop.f32.mrf.mxu0 }
 0x150   : > { %v1247_v18 = vpop.f32.mrf.mxu3  ;;  %v2133_v19 = vpack.c.bf16 %v1434_v15, %v1433_v14  ;;  %v1071_v21 = vpop.f32.mrf.mxu1  ;;  %v1159_v22 = vadd.f32 %v1158_v17, %v1070_v16 }
 0x151   : > { %v1072_v24 = vadd.f32 %v1071_v21, %v982_v20 }
 0x152   : > { %2177 = vst [vmem:[%s2607_s7 + $0x40] sm:$0xff] %v2133_v19   ;;  %v1248_v23 = vadd.f32 %v1247_v18, %v1159_v22 }
 0x154   : > { %v1403_v31 = vadd.f32 %v2598_v29, %v1248_v23 }
 0x156   : > { %v1435_v34 = vmax.f32 %v1403_v31, 0.0 }
 0x157   : > { %v1160_v25 = vpop.f32.mrf.mxu2  ;;  %v985_v28 = vpop.f32.mrf.mxu0 }
 0x158   : > { %v1249_v26 = vpop.f32.mrf.mxu3  ;;  %v1161_v27 = vadd.f32 %v1160_v25, %v1072_v24  ;;  %v1074_v30 = vpop.f32.mrf.mxu1 }
 0x159   : > { %v1075_v36 = vadd.f32 %v1074_v30, %v985_v28 }
 0x15a   : > { %v1250_v32 = vadd.f32 %v1249_v26, %v1161_v27 }
 0x15c   : > { %v1404_v33 = vadd.f32 %v2598_v29, %v1250_v32 }
 0x15e   : > { %v1436_v35 = vmax.f32 %v1404_v33, 0.0 }
 0x15f   : > { %v1163_v37 = vpop.f32.mrf.mxu2  ;;  %v987_v40 = vpop.f32.mrf.mxu0 }
 0x160   : > { %v1252_v38 = vpop.f32.mrf.mxu3  ;;  %v2138_v39 = vpack.c.bf16 %v1436_v35, %v1435_v34  ;;  %v1076_v41 = vpop.f32.mrf.mxu1  ;;  %v1164_v42 = vadd.f32 %v1163_v37, %v1075_v36 }
 0x161   : > { %v1077_v44 = vadd.f32 %v1076_v41, %v987_v40 }
 0x162   : > { %2178 = vst [vmem:[%s2607_s7 + $0x48] sm:$0xff] %v2138_v39   ;;  %v1253_v43 = vadd.f32 %v1252_v38, %v1164_v42 }
 0x164   : > { %v1405_v50 = vadd.f32 %v2598_v29, %v1253_v43 }
 0x166   : > { %v1437_v53 = vmax.f32 %v1405_v50, 0.0 }
 0x167   : > { %v1165_v45 = vpop.f32.mrf.mxu2  ;;  %v990_v48 = vpop.f32.mrf.mxu0 }
 0x168   : > { %v1254_v46 = vpop.f32.mrf.mxu3  ;;  %v1166_v47 = vadd.f32 %v1165_v45, %v1077_v44  ;;  %v1079_v49 = vpop.f32.mrf.mxu1 }
 0x169   : > { %v1080_v55 = vadd.f32 %v1079_v49, %v990_v48 }
 0x16a   : > { %v1255_v51 = vadd.f32 %v1254_v46, %v1166_v47 }
 0x16c   : > { %v1406_v52 = vadd.f32 %v2598_v29, %v1255_v51 }
 0x16e   : > { %v1438_v54 = vmax.f32 %v1406_v52, 0.0 }
 0x16f   : > { %v1168_v56 = vpop.f32.mrf.mxu2  ;;  %v992_v59 = vpop.f32.mrf.mxu0 }
 0x170   : > { %v1257_v57 = vpop.f32.mrf.mxu3  ;;  %v2143_v58 = vpack.c.bf16 %v1438_v54, %v1437_v53  ;;  %v1081_v60 = vpop.f32.mrf.mxu1  ;;  %v1169_v61 = vadd.f32 %v1168_v56, %v1080_v55 }
 0x171   : > { %v1082_v63 = vadd.f32 %v1081_v60, %v992_v59 }
 0x172   : > { %2179 = vst [vmem:[%s2607_s7 + $0x50] sm:$0xff] %v2143_v58   ;;  %v1258_v62 = vadd.f32 %v1257_v57, %v1169_v61 }
 0x174   : > { %v1407_v5 = vadd.f32 %v2598_v29, %v1258_v62 }
 0x176   : > { %v1439_v8 = vmax.f32 %v1407_v5, 0.0 }
 0x177   : > { %v1170_v0 = vpop.f32.mrf.mxu2  ;;  %v995_v3 = vpop.f32.mrf.mxu0 }
 0x178   : > { %v1259_v1 = vpop.f32.mrf.mxu3  ;;  %v1171_v2 = vadd.f32 %v1170_v0, %v1082_v63  ;;  %v1084_v4 = vpop.f32.mrf.mxu1 }
 0x179   : > { %v1085_v10 = vadd.f32 %v1084_v4, %v995_v3 }
 0x17a   : > { %v1260_v6 = vadd.f32 %v1259_v1, %v1171_v2 }
 0x17c   : > { %v1408_v7 = vadd.f32 %v2598_v29, %v1260_v6 }
 0x17e   : > { %v1440_v9 = vmax.f32 %v1408_v7, 0.0 }
 0x17f   : > { %v1173_v11 = vpop.f32.mrf.mxu2  ;;  %v997_v14 = vpop.f32.mrf.mxu0 }
 0x180   : > { %v1262_v12 = vpop.f32.mrf.mxu3  ;;  %v2148_v13 = vpack.c.bf16 %v1440_v9, %v1439_v8  ;;  %v1086_v15 = vpop.f32.mrf.mxu1  ;;  %v1174_v16 = vadd.f32 %v1173_v11, %v1085_v10 }
 0x181   : > { %v1087_v18 = vadd.f32 %v1086_v15, %v997_v14 }
 0x182   : > { %2180 = vst [vmem:[%s2607_s7 + $0x58] sm:$0xff] %v2148_v13   ;;  %v1263_v17 = vadd.f32 %v1262_v12, %v1174_v16 }
 0x184   : > { %v1409_v24 = vadd.f32 %v2598_v29, %v1263_v17 }
 0x186   : > { %v1441_v27 = vmax.f32 %v1409_v24, 0.0 }
 0x187   : > { %v1175_v19 = vpop.f32.mrf.mxu2  ;;  %v1000_v22 = vpop.f32.mrf.mxu0 }
 0x188   : > { %v1264_v20 = vpop.f32.mrf.mxu3  ;;  %v1176_v21 = vadd.f32 %v1175_v19, %v1087_v18  ;;  %v1089_v23 = vpop.f32.mrf.mxu1 }
 0x189   : > { %v1090_v30 = vadd.f32 %v1089_v23, %v1000_v22 }
 0x18a   : > { %v1265_v25 = vadd.f32 %v1264_v20, %v1176_v21 }
 0x18c   : > { %v1410_v26 = vadd.f32 %v2598_v29, %v1265_v25 }
 0x18e   : > { %v1442_v28 = vmax.f32 %v1410_v26, 0.0 }
 0x18f   : > { %v1178_v31 = vpop.f32.mrf.mxu2  ;;  %v1002_v34 = vpop.f32.mrf.mxu0 }
 0x190   : > { %v1267_v32 = vpop.f32.mrf.mxu3  ;;  %v2153_v33 = vpack.c.bf16 %v1442_v28, %v1441_v27  ;;  %v1091_v35 = vpop.f32.mrf.mxu1  ;;  %v1179_v36 = vadd.f32 %v1178_v31, %v1090_v30 }
 0x191   : > { %v1092_v38 = vadd.f32 %v1091_v35, %v1002_v34 }
 0x192   : > { %2181 = vst [vmem:[%s2607_s7 + $0x60] sm:$0xff] %v2153_v33   ;;  %v1268_v37 = vadd.f32 %v1267_v32, %v1179_v36 }
 0x194   : > { %v1411_v44 = vadd.f32 %v2598_v29, %v1268_v37 }
 0x196   : > { %v1443_v47 = vmax.f32 %v1411_v44, 0.0 }
 0x197   : > { %v1180_v39 = vpop.f32.mrf.mxu2  ;;  %v1005_v42 = vpop.f32.mrf.mxu0 }
 0x198   : > { %v1269_v40 = vpop.f32.mrf.mxu3  ;;  %v1181_v41 = vadd.f32 %v1180_v39, %v1092_v38  ;;  %v1094_v43 = vpop.f32.mrf.mxu1 }
 0x199   : > { %v1095_v49 = vadd.f32 %v1094_v43, %v1005_v42 }
 0x19a   : > { %v1270_v45 = vadd.f32 %v1269_v40, %v1181_v41 }
 0x19c   : > { %v1412_v46 = vadd.f32 %v2598_v29, %v1270_v45 }
 0x19e   : > { %v1444_v48 = vmax.f32 %v1412_v46, 0.0 }
 0x19f   : > { %v1183_v50 = vpop.f32.mrf.mxu2  ;;  %v1007_v53 = vpop.f32.mrf.mxu0 }
 0x1a0   : > { %v1272_v51 = vpop.f32.mrf.mxu3  ;;  %v2158_v52 = vpack.c.bf16 %v1444_v48, %v1443_v47  ;;  %v1096_v54 = vpop.f32.mrf.mxu1  ;;  %v1184_v55 = vadd.f32 %v1183_v50, %v1095_v49 }
 0x1a1   : > { %v1097_v57 = vadd.f32 %v1096_v54, %v1007_v53 }
 0x1a2   : > { %2182 = vst [vmem:[%s2607_s7 + $0x68] sm:$0xff] %v2158_v52   ;;  %v1273_v56 = vadd.f32 %v1272_v51, %v1184_v55 }
 0x1a4   : > { %v1413_v63 = vadd.f32 %v2598_v29, %v1273_v56 }
 0x1a6   : > { %v1445_v2 = vmax.f32 %v1413_v63, 0.0 }
 0x1a7   : > { %v1185_v58 = vpop.f32.mrf.mxu2  ;;  %v1010_v61 = vpop.f32.mrf.mxu0 }
 0x1a8   : > { %v1274_v59 = vpop.f32.mrf.mxu3  ;;  %v1186_v60 = vadd.f32 %v1185_v58, %v1097_v57  ;;  %v1099_v62 = vpop.f32.mrf.mxu1 }
 0x1a9   : > { %v1100_v4 = vadd.f32 %v1099_v62, %v1010_v61 }
 0x1aa   : > { %v1275_v0 = vadd.f32 %v1274_v59, %v1186_v60 }
 0x1ac   : > { %v1414_v1 = vadd.f32 %v2598_v29, %v1275_v0 }
 0x1ae   : > { %v1446_v3 = vmax.f32 %v1414_v1, 0.0 }
 0x1af   : > { %v1188_v5 = vpop.f32.mrf.mxu2  ;;  %v1012_v9 = vpop.f32.mrf.mxu0 }
 0x1b0   : > { %v1277_v6 = vpop.f32.mrf.mxu3  ;;  %v2163_v7 = vpack.c.bf16 %v1446_v3, %v1445_v2  ;;  %v1189_v8 = vadd.f32 %v1188_v5, %v1100_v4  ;;  %v1101_v10 = vpop.f32.mrf.mxu1 }
 0x1b1   : > { %v1102_v12 = vadd.f32 %v1101_v10, %v1012_v9 }
 0x1b2   : > { %2183 = vst [vmem:[%s2607_s7 + $0x70] sm:$0xff] %v2163_v7   ;;  %v1278_v11 = vadd.f32 %v1277_v6, %v1189_v8 }
 0x1b4   : > { %v1415_v16 = vadd.f32 %v2598_v29, %v1278_v11 }
 0x1b6   : > { %v1447_v19 = vmax.f32 %v1415_v16, 0.0 }
 0x1b7   : > { %v1190_v13 = vpop.f32.mrf.mxu2 }
 0x1b8   : > { %v1191_v14 = vadd.f32 %v1190_v13, %v1102_v12  ;;  %v1279_v15 = vpop.f32.mrf.mxu3 }
 0x1ba   : > { %v1280_v17 = vadd.f32 %v1279_v15, %v1191_v14 }
 0x1bc   : > { %v1416_v18 = vadd.f32 %v2598_v29, %v1280_v17 }
 0x1be   : > { %v1448_v20 = vmax.f32 %v1416_v18, 0.0 }
 0x1c0   : > { %v2168_v21 = vpack.c.bf16 %v1448_v20, %v1447_v19 }
 0x1c2   : > { %2184 = vst [vmem:[%s2607_s7 + $0x78] sm:$0xff] %v2168_v21  }
 0x1c3 PF: > { %s16_s17 = sadd.s32 1, %s2323_s17   ;;  %s2728_s12 = smov %s2307_s13 }
 0x1c4   : > { %p13_p0 = scmp.ge.s32.totalorder %s16_s17, 4   ;;  %s2729_s13 = smov %s2311_s14 }
 0x1c5   : > { %s2730_s14 = smov %s2396_s24  ;;  %s2731_s15 = smov %s2319_s16 }
 0x1c6   : > { %s2732_s16 = smov %s2734_s19  ;;  %15 = sbr.rel (!%p13_p0) target bundleno = 4 (0x4), region = 81 }
 0x1cb   :  { %1535 = vsyncpa [#allocation4], 1 }
 0x1cc   :  { %1537 = vsyncpa [#allocation4 + $0x1], 1 }

// kernel: gcn_forward.5
= control target key start
LH: loop header
LB: loop body
LE: loop exit
PB: predicated region body
PF: predicated region fallthrough
CT: control target
= control target key end

     0   :  { %8 = vsyncpa [#allocation3], 0  ;;  %s2576_s0 = inlined_call_operand.hbm [shape: bf16[512,512], index: 0, kind: input, shape index: {}]   ;;  %s2577_s1 = inlined_call_operand.vmem [shape: bf16[512,128], index: 1, kind: input, shape index: {}]   ;;  %s2578_s2 = inlined_call_operand.vmem [shape: f32[1,128], index: 2, kind: input, shape index: {}]   ;;  %s2579_s3 = inlined_call_operand.vmem [shape: f32[512,128], index: 3, kind: output, shape index: {}]  }
   0x1   :  { %10 = vsyncpa [#allocation3 + $0x1], 0  ;;  %s2192_s12 = smov 0   ;;  %s2194_s13 = smov 0  }
   0x2   :  { %s2196_s14 = smov 0   ;;  %s2198_s15 = smov 0  }
   0x3   :  { %s2200_s16 = smov 0   ;;  %s2202_s17 = smov 0  }
   0x4 LB: > { %s1534_s18 = sadd.s32 4294967295, %s2168_s17   ;;  %s28_s19 = sadd.s32 1, %s2164_s16  ;;  %s2168_s17 = sphi %s2202_s17, %s16_s17   ;;  %s2164_s16 = sphi %s2200_s16, %s2586_s16   ;;  %s2160_s15 = sphi %s2198_s15, %s2585_s15   ;;  %s2156_s14 = sphi %s2196_s14, %s2584_s14   ;;  %s2152_s13 = sphi %s2194_s13, %s2583_s13   ;;  %s2148_s12 = sphi %s2192_s12, %s2582_s12  }
   0x5   : > { %p30_p0 = scmp.ge.s32.totalorder %s28_s19, 2  ;;  %s37_s20 = sadd.s32 1, %s2156_s14 }
   0x6   : > { %p44_p1 = scmp.ne.s32.totalorder %s2156_s14, %s2152_s13  ;;  %p45_p2 = scmp.eq.s32.totalorder %s2168_s17, 0 }
   0x7   : > { %s2588_s19 = smov (%p30_p0, %s28_s19), 0  ;;  %p50_p4 = scmp.ne.s32.totalorder %s2152_s13, %s2148_s12 }
   0x8   : > { %p2228_p3 = por %p45_p2, %p44_p1  ;;  %s32_s22 = ssub.s32 %s2164_s16, %s2588_s19 }
   0x9   : > { %p51_p5 = scmp.eq.s32.totalorder %s1534_s18, 0  ;;  %p35_p6 = scmp.eq.s32.totalorder %s32_s22, 0 }
   0xa   : > { %p2036_p8 = scmp.lt.s32.totalorder %s2168_s17, 2  ;;  %s148_s25 = sand.u32 1, %s2156_s14  }
   0xb   : > { %p2235_p7 = por %p51_p5, %p50_p4  ;;  %s1933_s26 = sshll.u32 %s2164_s16, 9 }
   0xc   : > { %s2241_s24 = scalar_select %p35_p6, %s2156_s14, %s37_s20  }
   0xd   : > { %s1538_s27 = sshll.u32 %s148_s25, 9  ;;  %s160_s30 = scalar_lea.hbm %s2576_s0, %s1933_s26 }
   0xe   : > { %s161_s4 = sshll.u32 %s160_s30, 4  ;;  %s152_s5 = scalar_lea.vmem [#allocation2], %s1538_s27  ;;  %s162_s4 = int_to_ptr.hbm [resolvable:$true] %s161_s4 }
   0xf   : > { %s163_s6 = sshll.u32 %s152_s5, 4  ;;  %p2033_p9 = pnand %p2036_p8, %p2228_p3  ;;  %s164_s6 = int_to_ptr.vmem [resolvable:$true] %s163_s6 }
  0x10   : > { %p1542_p10 = scmp.ge.s32.totalorder %s2168_s17, 1  ;;  %p171_p11 = scmp.lt.s32.totalorder %s2168_s17, 3 }
  0x11   : > { %s149_s7 = scalar_lea.sflag [#allocation3], %s148_s25  ;;  %s2170_s8 = smov 256  }
  0x12   : > { %s2171_s9 = smov 16   ;;  %p172_p12 = pnand %p1542_p10, %p171_p11 }
  0x13   : > { %2035 = dma.hbm_to_vmem [thread:$0]  (!%p2033_p9), %s162_s4, 8192, %s164_s6, %s149_s7, %s2170_s8, %s2170_s8, %s2171_s9  }
  0x14   : > { %175 = sbr.rel (%p172_p12) target bundleno = 447 (0x1bf), region = 32  ;;  %s177_s10 = sand.u32 (!%p172_p12), 1, %s2152_s13  }
  0x15   : > { %s1543_s11 = sshll.u32 (!%p172_p12), %s177_s10, 9  ;;  %s178_s12 = scalar_lea.sflag (!%p172_p12), [#allocation3], %s177_s10 }
  0x16   : > { %s2253_s18 = scalar_lea.vmem (!%p172_p12), [#allocation2], %s1543_s11 }
  0x19   : > { %2143 = dma.done.wait (%p2235_p7), %s178_s12, 8192  }
  0x1a   : > { %2145 = vsyncadd (%p2235_p7), %s178_s12, 4294959104  ;;  %v1941_v0 = vld [vmem:[%s2577_s1 + $0x38] sm:$0xff]  ;;  %v1940_v4 = vld [vmem:[%s2577_s1 + $0x30] sm:$0xff]  ;;  %s1544_s29 = sshll.u32 %s2160_s15, 5 }
  0x1b   : > { %v1949_v1 = vld [vmem:[%s2577_s1 + $0x78] sm:$0xff]  ;;  %858 = vmatpush.bf16.msra.mxu0 %v1941_v0  ;;  %v1948_v5 = vld [vmem:[%s2577_s1 + $0x70] sm:$0xff]  ;;  %v1939_v8 = vld [vmem:[%s2577_s1 + $0x28] sm:$0xff]  ;;  %p208_p13 = scmp.lt.s32.totalorder %s1544_s29, 63 }
  0x1c   : > { %v1957_v2 = vld [vmem:[%s2577_s1 + $0xb8] sm:$0xff]  ;;  %947 = vmatpush.bf16.msra.mxu1 %v1949_v1  ;;  %v1956_v6 = vld [vmem:[%s2577_s1 + $0xb0] sm:$0xff]  ;;  %v1947_v9 = vld [vmem:[%s2577_s1 + $0x68] sm:$0xff] }
  0x1d   : > { %v1965_v3 = vld [vmem:[%s2577_s1 + $0xf8] sm:$0xff]  ;;  %1036 = vmatpush.bf16.msra.mxu2 %v1957_v2  ;;  %v1964_v7 = vld [vmem:[%s2577_s1 + $0xf0] sm:$0xff]  ;;  %v1955_v10 = vld [vmem:[%s2577_s1 + $0xa8] sm:$0xff]  ;;  %s2590_s29 = smov (!%p208_p13, %s1544_s29), 63 }
  0x1e   : > { %1125 = vmatpush.bf16.msra.mxu3 %v1965_v3  ;;  %v1963_v11 = vld [vmem:[%s2577_s1 + $0xe8] sm:$0xff]  ;;  %v1938_v12 = vld [vmem:[%s2577_s1 + $0x20] sm:$0xff]  ;;  %v1937_v16 = vld [vmem:[%s2577_s1 + $0x18] sm:$0xff]  ;;  %s1545_s15 = sshll.u32 %s2590_s29, 3 }
  0x1f   : > { %859 = vmatpush.bf16.msra.mxu0 %v1940_v4  ;;  %v1946_v13 = vld [vmem:[%s2577_s1 + $0x60] sm:$0xff]  ;;  %v1945_v17 = vld [vmem:[%s2577_s1 + $0x58] sm:$0xff]  ;;  %v1936_v20 = vld [vmem:[%s2577_s1 + $0x10] sm:$0xff]  ;;  %s2436_s6 = scalar_lea.vmem %s2579_s3, %s1545_s15 }
  0x20   : > { %948 = vmatpush.bf16.msra.mxu1 %v1948_v5  ;;  %v1954_v14 = vld [vmem:[%s2577_s1 + $0xa0] sm:$0xff]  ;;  %v1953_v18 = vld [vmem:[%s2577_s1 + $0x98] sm:$0xff]  ;;  %v1944_v21 = vld [vmem:[%s2577_s1 + $0x50] sm:$0xff] }
  0x21   : > { %1037 = vmatpush.bf16.msra.mxu2 %v1956_v6  ;;  %v1962_v15 = vld [vmem:[%s2577_s1 + $0xe0] sm:$0xff]  ;;  %v1961_v19 = vld [vmem:[%s2577_s1 + $0xd8] sm:$0xff]  ;;  %v1952_v22 = vld [vmem:[%s2577_s1 + $0x90] sm:$0xff] }
  0x22   : > { %1126 = vmatpush.bf16.msra.mxu3 %v1964_v7  ;;  %v1960_v23 = vld [vmem:[%s2577_s1 + $0xd0] sm:$0xff]  ;;  %v1935_v24 = vld [vmem:[%s2577_s1 + $0x8] sm:$0xff]  ;;  %v1934_v28 = vld [vmem:[%s2577_s1] sm:$0xff] }
  0x23   : > { %860 = vmatpush.bf16.msra.mxu0 %v1939_v8  ;;  %v1943_v25 = vld [vmem:[%s2577_s1 + $0x48] sm:$0xff]  ;;  %v1942_v29 = vld [vmem:[%s2577_s1 + $0x40] sm:$0xff]  ;;  %v1968_v33 = vld [vmem:[%s2253_s18 + $0xc] sm:$0xf0] }
  0x24   : > { %949 = vmatpush.bf16.msra.mxu1 %v1947_v9  ;;  %v1951_v26 = vld [vmem:[%s2577_s1 + $0x88] sm:$0xff]  ;;  %v1950_v30 = vld [vmem:[%s2577_s1 + $0x80] sm:$0xff]  ;;  %v1550_v35 = vld [vmem:[%s2253_s18 + $0x10] sm:$0xf0] }
  0x25   : > { %1038 = vmatpush.bf16.msra.mxu2 %v1955_v10  ;;  %v1959_v27 = vld [vmem:[%s2577_s1 + $0xc8] sm:$0xff]  ;;  %v1958_v31 = vld [vmem:[%s2577_s1 + $0xc0] sm:$0xff]  ;;  %v1969_v37 = vld [vmem:[%s2253_s18 + $0x14] sm:$0xf0] }
  0x26   : > { %1127 = vmatpush.bf16.msra.mxu3 %v1963_v11  ;;  %v1548_v32 = vld [vmem:[%s2253_s18] sm:$0xf]  ;;  %v1966_v34 = vld [vmem:[%s2253_s18 + $0x4] sm:$0xf]  ;;  %v1556_v36 = vld [vmem:[%s2253_s18 + $0x8] sm:$0xf] }
  0x27   : > { %861 = vmatpush.bf16.msra.mxu0 %v1938_v12  ;;  %v1967_v38 = vld [vmem:[%s2253_s18 + $0xc] sm:$0xf]  ;;  %v1558_v39 = vld [vmem:[%s2253_s18 + $0x18] sm:$0xf0]  ;;  %v1549_v40 = vor.u32 %v1968_v33, %v1548_v32  ;;  %v1553_v41 = vor.u32 %v1966_v34, %v1550_v35  ;;  %v1557_v42 = vor.u32 %v1969_v37, %v1556_v36  ;;  %v1564_v44 = vld [vmem:[%s2253_s18 + $0x20] sm:$0xf] }
  0x28   : > { %950 = vmatpush.bf16.msra.mxu1 %v1946_v13  ;;  %v1561_v43 = vor.u32 %v1967_v38, %v1558_v39  ;;  %v1972_v45 = vld [vmem:[%s2253_s18 + $0x2c] sm:$0xf0]  ;;  %v1970_v46 = vld [vmem:[%s2253_s18 + $0x24] sm:$0xf]  ;;  %v1566_v47 = vld [vmem:[%s2253_s18 + $0x30] sm:$0xf0] }
  0x29   : > { %1039 = vmatpush.bf16.msra.mxu2 %v1954_v14  ;;  %v1572_v48 = vld [vmem:[%s2253_s18 + $0x28] sm:$0xf]  ;;  %v1973_v49 = vld [vmem:[%s2253_s18 + $0x34] sm:$0xf0]  ;;  %v1971_v50 = vld [vmem:[%s2253_s18 + $0x2c] sm:$0xf]  ;;  %v1565_v52 = vor.u32 %v1972_v45, %v1564_v44  ;;  %v1569_v53 = vor.u32 %v1970_v46, %v1566_v47 }
  0x2a   : > { %1128 = vmatpush.bf16.msra.mxu3 %v1962_v15  ;;  %v1574_v51 = vld [vmem:[%s2253_s18 + $0x38] sm:$0xf0]  ;;  %v1573_v54 = vor.u32 %v1973_v49, %v1572_v48  ;;  %v1580_v56 = vld [vmem:[%s2253_s18 + $0x40] sm:$0xf]  ;;  %v1976_v57 = vld [vmem:[%s2253_s18 + $0x4c] sm:$0xf0] }
  0x2b   : > { %862 = vmatpush.bf16.msra.mxu0 %v1937_v16  ;;  %v1577_v55 = vor.u32 %v1971_v50, %v1574_v51  ;;  %v1974_v58 = vld [vmem:[%s2253_s18 + $0x44] sm:$0xf]  ;;  %v1582_v59 = vld [vmem:[%s2253_s18 + $0x50] sm:$0xf0]  ;;  %v1588_v60 = vld [vmem:[%s2253_s18 + $0x48] sm:$0xf]  ;;  %v1581_v0 = vor.u32 %v1976_v57, %v1580_v56 }
  0x2c   : > { %951 = vmatpush.bf16.msra.mxu1 %v1945_v17  ;;  %v1977_v61 = vld [vmem:[%s2253_s18 + $0x54] sm:$0xf0]  ;;  %v1975_v62 = vld [vmem:[%s2253_s18 + $0x4c] sm:$0xf]  ;;  %v1590_v63 = vld [vmem:[%s2253_s18 + $0x58] sm:$0xf0]  ;;  %v1585_v1 = vor.u32 %v1974_v58, %v1582_v59 }
  0x2d   : > { %1040 = vmatpush.bf16.msra.mxu2 %v1953_v18  ;;  %v1589_v2 = vor.u32 %v1977_v61, %v1588_v60  ;;  %v1593_v3 = vor.u32 %v1975_v62, %v1590_v63  ;;  %v1596_v4 = vld [vmem:[%s2253_s18 + $0x60] sm:$0xf]  ;;  %v1980_v5 = vld [vmem:[%s2253_s18 + $0x6c] sm:$0xf0]  ;;  %v1978_v6 = vld [vmem:[%s2253_s18 + $0x64] sm:$0xf] }
  0x2e   : > { %1129 = vmatpush.bf16.msra.mxu3 %v1961_v19  ;;  %v1598_v7 = vld [vmem:[%s2253_s18 + $0x70] sm:$0xf0]  ;;  %v1604_v8 = vld [vmem:[%s2253_s18 + $0x68] sm:$0xf]  ;;  %v1981_v9 = vld [vmem:[%s2253_s18 + $0x74] sm:$0xf0]  ;;  %v1597_v12 = vor.u32 %v1980_v5, %v1596_v4 }
  0x2f   : > { %863 = vmatpush.bf16.msra.mxu0 %v1936_v20  ;;  %v1979_v10 = vld [vmem:[%s2253_s18 + $0x6c] sm:$0xf]  ;;  %v1606_v11 = vld [vmem:[%s2253_s18 + $0x78] sm:$0xf0]  ;;  %v1601_v13 = vor.u32 %v1978_v6, %v1598_v7  ;;  %v1605_v14 = vor.u32 %v1981_v9, %v1604_v8  ;;  %v1612_v16 = vld [vmem:[%s2253_s18 + $0x80] sm:$0xf] }
  0x30   : > { %952 = vmatpush.bf16.msra.mxu1 %v1944_v21  ;;  %v1609_v15 = vor.u32 %v1979_v10, %v1606_v11  ;;  %v1984_v17 = vld [vmem:[%s2253_s18 + $0x8c] sm:$0xf0]  ;;  %v1982_v18 = vld [vmem:[%s2253_s18 + $0x84] sm:$0xf]  ;;  %v1614_v19 = vld [vmem:[%s2253_s18 + $0x90] sm:$0xf0] }
  0x31   : > { %1041 = vmatpush.bf16.msra.mxu2 %v1952_v22  ;;  %v1620_v20 = vld [vmem:[%s2253_s18 + $0x88] sm:$0xf]  ;;  %v1985_v21 = vld [vmem:[%s2253_s18 + $0x94] sm:$0xf0]  ;;  %v1983_v22 = vld [vmem:[%s2253_s18 + $0x8c] sm:$0xf] }
  0x32   : > { %1130 = vmatpush.bf16.msra.mxu3 %v1960_v23  ;;  %v1622_v23 = vld [vmem:[%s2253_s18 + $0x98] sm:$0xf0]  ;;  %v1636_v32 = vld [vmem:[%s2253_s18 + $0xa8] sm:$0xf]  ;;  %v1989_v33 = vld [vmem:[%s2253_s18 + $0xb4] sm:$0xf0] }
  0x33   : > { %864 = vmatpush.bf16.msra.mxu0 %v1935_v24  ;;  %v1613_v24 = vor.u32 %v1984_v17, %v1612_v16  ;;  %v1987_v34 = vld [vmem:[%s2253_s18 + $0xac] sm:$0xf]  ;;  %v1638_v35 = vld [vmem:[%s2253_s18 + $0xb8] sm:$0xf0]  ;;  %v1637_v38 = vor.u32 %v1989_v33, %v1636_v32  ;;  %v1652_v44 = vld [vmem:[%s2253_s18 + $0xc8] sm:$0xf] }
  0x34   : > { %953 = vmatpush.bf16.msra.mxu1 %v1943_v25  ;;  %v1617_v25 = vor.u32 %v1982_v18, %v1614_v19  ;;  %v1641_v39 = vor.u32 %v1987_v34, %v1638_v35  ;;  %v1993_v45 = vld [vmem:[%s2253_s18 + $0xd4] sm:$0xf0]  ;;  %v1991_v46 = vld [vmem:[%s2253_s18 + $0xcc] sm:$0xf]  ;;  %v1654_v47 = vld [vmem:[%s2253_s18 + $0xd8] sm:$0xf0] }
  0x35   : > { %1042 = vmatpush.bf16.msra.mxu2 %v1951_v26  ;;  %v1621_v26 = vor.u32 %v1985_v21, %v1620_v20  ;;  %v1653_v50 = vor.u32 %v1993_v45, %v1652_v44  ;;  %v1657_v51 = vor.u32 %v1991_v46, %v1654_v47  ;;  %v1668_v56 = vld [vmem:[%s2253_s18 + $0xe8] sm:$0xf]  ;;  %v1997_v57 = vld [vmem:[%s2253_s18 + $0xf4] sm:$0xf0]  ;;  %v1995_v58 = vld [vmem:[%s2253_s18 + $0xec] sm:$0xf] }
  0x36   : > { %1131 = vmatpush.bf16.msra.mxu3 %v1959_v27  ;;  %v1625_v27 = vor.u32 %v1983_v22, %v1622_v23  ;;  %v1670_v59 = vld [vmem:[%s2253_s18 + $0xf8] sm:$0xf0]  ;;  %v1669_v62 = vor.u32 %v1997_v57, %v1668_v56  ;;  %v1684_v4 = vld [vmem:[%s2253_s18 + $0x108] sm:$0xf]  ;;  %v2001_v5 = vld [vmem:[%s2253_s18 + $0x114] sm:$0xf0] }
  0x37   : > { %865 = vmatpush.bf16.msra.mxu0 %v1934_v28  ;;  %v1628_v28 = vld [vmem:[%s2253_s18 + $0xa0] sm:$0xf]  ;;  %v1673_v63 = vor.u32 %v1995_v58, %v1670_v59  ;;  %v1999_v6 = vld [vmem:[%s2253_s18 + $0x10c] sm:$0xf]  ;;  %v1686_v7 = vld [vmem:[%s2253_s18 + $0x118] sm:$0xf0] }
  0x38   : > { %954 = vmatpush.bf16.msra.mxu1 %v1942_v29  ;;  %v1988_v29 = vld [vmem:[%s2253_s18 + $0xac] sm:$0xf0]  ;;  %v2431_v18 = vld [vmem:[%s2578_s2] ss:$0 sm:$0xff]  ;;  %v2009_v56 = vld [vmem:[%s2253_s18 + $0x154] sm:$0xf0] }
  0x39   : > { %1043 = vmatpush.bf16.msra.mxu2 %v1950_v30  ;;  %v1986_v30 = vld [vmem:[%s2253_s18 + $0xa4] sm:$0xf]  ;;  %v1629_v36 = vor.u32 %v1988_v29, %v1628_v28  ;;  %v1692_v22 = vld [vmem:[%s2253_s18 + $0x120] sm:$0xf]  ;;  %v2004_v23 = vld [vmem:[%s2253_s18 + $0x12c] sm:$0xf0] }
  0x3a   : > { %1132 = vmatpush.bf16.msra.mxu3 %v1958_v31  ;;  %866 = vmatmul.bf16.vlgmr.msra.gmra.mxu0 %v1549_v40  ;;  %v1630_v31 = vld [vmem:[%s2253_s18 + $0xb0] sm:$0xf0]  ;;  %v1644_v40 = vld [vmem:[%s2253_s18 + $0xc0] sm:$0xf]  ;;  %v2005_v28 = vld [vmem:[%s2253_s18 + $0x134] sm:$0xf0]  ;;  %v1693_v34 = vor.u32 %v2004_v23, %v1692_v22 }
  0x3b   : > { %955 = vmatmul.bf16.vlgmr.msra.gmra.mxu1 %v1553_v41  ;;  %v1633_v37 = vor.u32 %v1986_v30, %v1630_v31  ;;  %v1992_v41 = vld [vmem:[%s2253_s18 + $0xcc] sm:$0xf0]  ;;  %v2003_v29 = vld [vmem:[%s2253_s18 + $0x12c] sm:$0xf]  ;;  %v1702_v30 = vld [vmem:[%s2253_s18 + $0x138] sm:$0xf0] }
  0x3c   : > { %1044 = vmatmul.bf16.vlgmr.msra.gmra.mxu2 %v1557_v42  ;;  %v1990_v42 = vld [vmem:[%s2253_s18 + $0xc4] sm:$0xf]  ;;  %v1645_v48 = vor.u32 %v1992_v41, %v1644_v40  ;;  %v1705_v40 = vor.u32 %v2003_v29, %v1702_v30  ;;  %v2007_v57 = vld [vmem:[%s2253_s18 + $0x14c] sm:$0xf]  ;;  %v1718_v58 = vld [vmem:[%s2253_s18 + $0x158] sm:$0xf0] }
  0x3d   : > { %1133 = vmatmul.bf16.vlgmr.msra.gmra.mxu3 %v1561_v43  ;;  %v1646_v43 = vld [vmem:[%s2253_s18 + $0xd0] sm:$0xf0]  ;;  %v2011_v22 = vld [vmem:[%s2253_s18 + $0x16c] sm:$0xf]  ;;  %v1734_v23 = vld [vmem:[%s2253_s18 + $0x178] sm:$0xf0] }
  0x3e   : > { %v1649_v49 = vor.u32 %v1990_v42, %v1646_v43 }
  0x4a   : > { %871 = vmatmul.bf16.gmra.mxu0 %v1565_v52  ;;  %v1660_v52 = vld [vmem:[%s2253_s18 + $0xe0] sm:$0xf] }
  0x4b   : > { %960 = vmatmul.bf16.gmra.mxu1 %v1569_v53  ;;  %v1996_v53 = vld [vmem:[%s2253_s18 + $0xec] sm:$0xf0] }
  0x4c   : > { %1049 = vmatmul.bf16.gmra.mxu2 %v1573_v54  ;;  %v1994_v54 = vld [vmem:[%s2253_s18 + $0xe4] sm:$0xf]  ;;  %v1661_v60 = vor.u32 %v1996_v53, %v1660_v52 }
  0x4d   : > { %1138 = vmatmul.bf16.gmra.mxu3 %v1577_v55  ;;  %v1662_v55 = vld [vmem:[%s2253_s18 + $0xf0] sm:$0xf0]  ;;  %v2006_v53 = vld [vmem:[%s2253_s18 + $0x144] sm:$0xf] }
  0x4e   : > { %v1665_v61 = vor.u32 %v1994_v54, %v1662_v55  ;;  %v1710_v54 = vld [vmem:[%s2253_s18 + $0x150] sm:$0xf0]  ;;  %v1716_v55 = vld [vmem:[%s2253_s18 + $0x148] sm:$0xf] }
  0x5a   : > { %876 = vmatmul.bf16.gmra.mxu0 %v1581_v0  ;;  %v1676_v0 = vld [vmem:[%s2253_s18 + $0x100] sm:$0xf] }
  0x5b   : > { %965 = vmatmul.bf16.gmra.mxu1 %v1585_v1  ;;  %v2000_v1 = vld [vmem:[%s2253_s18 + $0x10c] sm:$0xf0] }
  0x5c   : > { %1054 = vmatmul.bf16.gmra.mxu2 %v1589_v2  ;;  %v1998_v2 = vld [vmem:[%s2253_s18 + $0x104] sm:$0xf]  ;;  %v1677_v8 = vor.u32 %v2000_v1, %v1676_v0 }
  0x5d   : > { %1143 = vmatmul.bf16.gmra.mxu3 %v1593_v3  ;;  %v1678_v3 = vld [vmem:[%s2253_s18 + $0x110] sm:$0xf0] }
  0x5e   : > { %v1681_v9 = vor.u32 %v1998_v2, %v1678_v3  ;;  %v1717_v3 = vor.u32 %v2009_v56, %v1716_v55 }
  0x6a   : > { %881 = vmatmul.bf16.gmra.mxu0 %v1597_v12  ;;  %v1685_v12 = vor.u32 %v2001_v5, %v1684_v4  ;;  %v1721_v4 = vor.u32 %v2007_v57, %v1718_v58 }
  0x6b   : > { %970 = vmatmul.bf16.gmra.mxu1 %v1601_v13  ;;  %v1689_v13 = vor.u32 %v1999_v6, %v1686_v7 }
  0x6c   : > { %1059 = vmatmul.bf16.gmra.mxu2 %v1605_v14 }
  0x6d   : > { %1148 = vmatmul.bf16.gmra.mxu3 %v1609_v15 }
  0x7a   : > { %886 = vmatmul.bf16.gmra.mxu0 %v1613_v24 }
  0x7b   : > { %975 = vmatmul.bf16.gmra.mxu1 %v1617_v25  ;;  %v2002_v25 = vld [vmem:[%s2253_s18 + $0x124] sm:$0xf] }
  0x7c   : > { %1064 = vmatmul.bf16.gmra.mxu2 %v1621_v26  ;;  %v1694_v26 = vld [vmem:[%s2253_s18 + $0x130] sm:$0xf0] }
  0x7d   : > { %1153 = vmatmul.bf16.gmra.mxu3 %v1625_v27  ;;  %v1700_v27 = vld [vmem:[%s2253_s18 + $0x128] sm:$0xf]  ;;  %v1697_v35 = vor.u32 %v2002_v25, %v1694_v26 }
  0x8a   : > { %891 = vmatmul.bf16.gmra.mxu0 %v1629_v36 }
  0x8b   : > { %980 = vmatmul.bf16.gmra.mxu1 %v1633_v37 }
  0x8c   : > { %1069 = vmatmul.bf16.gmra.mxu2 %v1637_v38 }
  0x8d   : > { %1158 = vmatmul.bf16.gmra.mxu3 %v1641_v39  ;;  %v1701_v39 = vor.u32 %v2005_v28, %v1700_v27 }
  0x9a   : > { %896 = vmatmul.bf16.gmra.mxu0 %v1645_v48 }
  0x9b   : > { %985 = vmatmul.bf16.gmra.mxu1 %v1649_v49 }
  0x9c   : > { %1074 = vmatmul.bf16.gmra.mxu2 %v1653_v50  ;;  %v1708_v50 = vld [vmem:[%s2253_s18 + $0x140] sm:$0xf] }
  0x9d   : > { %1163 = vmatmul.bf16.gmra.mxu3 %v1657_v51  ;;  %v2008_v51 = vld [vmem:[%s2253_s18 + $0x14c] sm:$0xf0] }
  0xaa   : > { %901 = vmatmul.bf16.gmra.mxu0 %v1661_v60 }
  0xab   : > { %990 = vmatmul.bf16.gmra.mxu1 %v1665_v61 }
  0xac   : > { %1079 = vmatmul.bf16.gmra.mxu2 %v1669_v62  ;;  %v1709_v62 = vor.u32 %v2008_v51, %v1708_v50  ;;  %v2015_v50 = vld [vmem:[%s2253_s18 + $0x18c] sm:$0xf]  ;;  %v1750_v51 = vld [vmem:[%s2253_s18 + $0x198] sm:$0xf0] }
  0xad   : > { %1168 = vmatmul.bf16.gmra.mxu3 %v1673_v63  ;;  %v1713_v63 = vor.u32 %v2006_v53, %v1710_v54 }
  0xb7   : > { %v867_v10 = vpop.f32.mrf.mxu0 }
  0xb8   : > { %v956_v11 = vpop.f32.mrf.mxu1 }
  0xb9   : > { %v957_v14 = vadd.f32 %v956_v11, %v867_v10 }
  0xba   : > { %906 = vmatmul.bf16.gmra.mxu0 %v1677_v8 }
  0xbb   : > { %995 = vmatmul.bf16.gmra.mxu1 %v1681_v9 }
  0xbc   : > { %1084 = vmatmul.bf16.gmra.mxu2 %v1685_v12 }
  0xbd   : > { %1173 = vmatmul.bf16.gmra.mxu3 %v1689_v13 }
  0xbf   : > { %v1045_v15 = vpop.f32.mrf.mxu2  ;;  %v869_v19 = vpop.f32.mrf.mxu0 }
  0xc0   : > { %v1134_v16 = vpop.f32.mrf.mxu3  ;;  %v1046_v17 = vadd.f32 %v1045_v15, %v957_v14  ;;  %v958_v20 = vpop.f32.mrf.mxu1  ;;  %v1724_v14 = vld [vmem:[%s2253_s18 + $0x160] sm:$0xf]  ;;  %v2012_v15 = vld [vmem:[%s2253_s18 + $0x16c] sm:$0xf0] }
  0xc1   : > { %v959_v31 = vadd.f32 %v958_v20, %v869_v19  ;;  %v1726_v19 = vld [vmem:[%s2253_s18 + $0x170] sm:$0xf0]  ;;  %v1732_v20 = vld [vmem:[%s2253_s18 + $0x168] sm:$0xf]  ;;  %v1725_v27 = vor.u32 %v2012_v15, %v1724_v14  ;;  %v2019_v14 = vld [vmem:[%s2253_s18 + $0x1ac] sm:$0xf] }
  0xc2   : > { %v1135_v21 = vadd.f32 %v1134_v16, %v1046_v17  ;;  %v2010_v17 = vld [vmem:[%s2253_s18 + $0x164] sm:$0xf]  ;;  %v1766_v15 = vld [vmem:[%s2253_s18 + $0x1b8] sm:$0xf0] }
  0xc3   : > { %v1729_v28 = vor.u32 %v2010_v17, %v1726_v19 }
  0xc4   : > { %v1389_v24 = vadd.f32 %v2431_v18, %v1135_v21  ;;  %v2013_v21 = vld [vmem:[%s2253_s18 + $0x174] sm:$0xf0] }
  0xc6   : > { %1421 = vst [vmem:[%s2436_s6] sm:$0xff] %v1389_v24 }
  0xc7   : > { %v1047_v32 = vpop.f32.mrf.mxu2  ;;  %v872_v37 = vpop.f32.mrf.mxu0 }
  0xc8   : > { %v1136_v33 = vpop.f32.mrf.mxu3  ;;  %v1048_v36 = vadd.f32 %v1047_v32, %v959_v31  ;;  %v961_v38 = vpop.f32.mrf.mxu1  ;;  %v1733_v32 = vor.u32 %v2013_v21, %v1732_v20 }
  0xc9   : > { %v962_v43 = vadd.f32 %v961_v38, %v872_v37 }
  0xca   : > { %v1137_v41 = vadd.f32 %v1136_v33, %v1048_v36  ;;  %911 = vmatmul.bf16.gmra.mxu0 %v1693_v34  ;;  %v1737_v33 = vor.u32 %v2011_v22, %v1734_v23 }
  0xcb   : > { %1000 = vmatmul.bf16.gmra.mxu1 %v1697_v35 }
  0xcc   : > { %v1390_v42 = vadd.f32 %v2431_v18, %v1137_v41  ;;  %1089 = vmatmul.bf16.gmra.mxu2 %v1701_v39 }
  0xcd   : > { %1178 = vmatmul.bf16.gmra.mxu3 %v1705_v40 }
  0xce   : > { %1422 = vst [vmem:[%s2436_s6 + $0x8] sm:$0xff] %v1390_v42 }
  0xcf   : > { %v1050_v44 = vpop.f32.mrf.mxu2  ;;  %v874_v47 = vpop.f32.mrf.mxu0 }
  0xd0   : > { %v1139_v45 = vpop.f32.mrf.mxu3  ;;  %v1051_v46 = vadd.f32 %v1050_v44, %v962_v43  ;;  %v963_v48 = vpop.f32.mrf.mxu1  ;;  %v1740_v43 = vld [vmem:[%s2253_s18 + $0x180] sm:$0xf]  ;;  %v2016_v44 = vld [vmem:[%s2253_s18 + $0x18c] sm:$0xf0] }
  0xd1   : > { %v964_v59 = vadd.f32 %v963_v48, %v874_v47  ;;  %v1742_v47 = vld [vmem:[%s2253_s18 + $0x190] sm:$0xf0]  ;;  %v1748_v48 = vld [vmem:[%s2253_s18 + $0x188] sm:$0xf]  ;;  %v1741_v55 = vor.u32 %v2016_v44, %v1740_v43  ;;  %v2023_v43 = vld [vmem:[%s2253_s18 + $0x1cc] sm:$0xf] }
  0xd2   : > { %v1140_v49 = vadd.f32 %v1139_v45, %v1051_v46  ;;  %v2014_v46 = vld [vmem:[%s2253_s18 + $0x184] sm:$0xf]  ;;  %v1782_v44 = vld [vmem:[%s2253_s18 + $0x1d8] sm:$0xf0] }
  0xd3   : > { %v1745_v56 = vor.u32 %v2014_v46, %v1742_v47 }
  0xd4   : > { %v1391_v52 = vadd.f32 %v2431_v18, %v1140_v49  ;;  %v2017_v49 = vld [vmem:[%s2253_s18 + $0x194] sm:$0xf0] }
  0xd6   : > { %1423 = vst [vmem:[%s2436_s6 + $0x10] sm:$0xff] %v1391_v52 }
  0xd7   : > { %v1052_v60 = vpop.f32.mrf.mxu2  ;;  %v877_v1 = vpop.f32.mrf.mxu0 }
  0xd8   : > { %v1141_v61 = vpop.f32.mrf.mxu3  ;;  %v1053_v0 = vadd.f32 %v1052_v60, %v964_v59  ;;  %v966_v2 = vpop.f32.mrf.mxu1  ;;  %v1749_v60 = vor.u32 %v2017_v49, %v1748_v48 }
  0xd9   : > { %v967_v7 = vadd.f32 %v966_v2, %v877_v1 }
  0xda   : > { %v1142_v5 = vadd.f32 %v1141_v61, %v1053_v0  ;;  %916 = vmatmul.bf16.gmra.mxu0 %v1709_v62  ;;  %v1753_v61 = vor.u32 %v2015_v50, %v1750_v51 }
  0xdb   : > { %1005 = vmatmul.bf16.gmra.mxu1 %v1713_v63 }
  0xdc   : > { %v1392_v6 = vadd.f32 %v2431_v18, %v1142_v5  ;;  %1094 = vmatmul.bf16.gmra.mxu2 %v1717_v3 }
  0xdd   : > { %1183 = vmatmul.bf16.gmra.mxu3 %v1721_v4 }
  0xde   : > { %1424 = vst [vmem:[%s2436_s6 + $0x18] sm:$0xff] %v1392_v6 }
  0xdf   : > { %v1055_v8 = vpop.f32.mrf.mxu2  ;;  %v879_v11 = vpop.f32.mrf.mxu0 }
  0xe0   : > { %v1144_v9 = vpop.f32.mrf.mxu3  ;;  %v1056_v10 = vadd.f32 %v1055_v8, %v967_v7  ;;  %v968_v12 = vpop.f32.mrf.mxu1  ;;  %v1756_v7 = vld [vmem:[%s2253_s18 + $0x1a0] sm:$0xf]  ;;  %v2020_v8 = vld [vmem:[%s2253_s18 + $0x1ac] sm:$0xf0] }
  0xe1   : > { %v969_v24 = vadd.f32 %v968_v12, %v879_v11  ;;  %v1758_v11 = vld [vmem:[%s2253_s18 + $0x1b0] sm:$0xf0]  ;;  %v1764_v12 = vld [vmem:[%s2253_s18 + $0x1a8] sm:$0xf]  ;;  %v1757_v20 = vor.u32 %v2020_v8, %v1756_v7  ;;  %v2027_v7 = vld [vmem:[%s2253_s18 + $0x1ec] sm:$0xf] }
  0xe2   : > { %v1145_v13 = vadd.f32 %v1144_v9, %v1056_v10  ;;  %v2018_v10 = vld [vmem:[%s2253_s18 + $0x1a4] sm:$0xf]  ;;  %v1798_v8 = vld [vmem:[%s2253_s18 + $0x1f8] sm:$0xf0] }
  0xe3   : > { %v1761_v21 = vor.u32 %v2018_v10, %v1758_v11 }
  0xe4   : > { %v1393_v16 = vadd.f32 %v2431_v18, %v1145_v13  ;;  %v2021_v13 = vld [vmem:[%s2253_s18 + $0x1b4] sm:$0xf0] }
  0xe6   : > { %1425 = vst [vmem:[%s2436_s6 + $0x20] sm:$0xff] %v1393_v16 }
  0xe7   : > { %v1057_v25 = vpop.f32.mrf.mxu2  ;;  %v882_v30 = vpop.f32.mrf.mxu0 }
  0xe8   : > { %v1146_v26 = vpop.f32.mrf.mxu3  ;;  %v1058_v29 = vadd.f32 %v1057_v25, %v969_v24  ;;  %v971_v31 = vpop.f32.mrf.mxu1  ;;  %v1765_v25 = vor.u32 %v2021_v13, %v1764_v12 }
  0xe9   : > { %v972_v36 = vadd.f32 %v971_v31, %v882_v30 }
  0xea   : > { %v1147_v34 = vadd.f32 %v1146_v26, %v1058_v29  ;;  %921 = vmatmul.bf16.gmra.mxu0 %v1725_v27  ;;  %v1769_v26 = vor.u32 %v2019_v14, %v1766_v15 }
  0xeb   : > { %1010 = vmatmul.bf16.gmra.mxu1 %v1729_v28 }
  0xec   : > { %v1394_v35 = vadd.f32 %v2431_v18, %v1147_v34  ;;  %1099 = vmatmul.bf16.gmra.mxu2 %v1733_v32 }
  0xed   : > { %1188 = vmatmul.bf16.gmra.mxu3 %v1737_v33 }
  0xee   : > { %1426 = vst [vmem:[%s2436_s6 + $0x28] sm:$0xff] %v1394_v35 }
  0xef   : > { %v1060_v37 = vpop.f32.mrf.mxu2  ;;  %v884_v40 = vpop.f32.mrf.mxu0 }
  0xf0   : > { %v1149_v38 = vpop.f32.mrf.mxu3  ;;  %v1061_v39 = vadd.f32 %v1060_v37, %v972_v36  ;;  %v973_v41 = vpop.f32.mrf.mxu1  ;;  %v1772_v36 = vld [vmem:[%s2253_s18 + $0x1c0] sm:$0xf]  ;;  %v2024_v37 = vld [vmem:[%s2253_s18 + $0x1cc] sm:$0xf0] }
  0xf1   : > { %v974_v52 = vadd.f32 %v973_v41, %v884_v40  ;;  %v1774_v40 = vld [vmem:[%s2253_s18 + $0x1d0] sm:$0xf0]  ;;  %v1780_v41 = vld [vmem:[%s2253_s18 + $0x1c8] sm:$0xf]  ;;  %v1773_v48 = vor.u32 %v2024_v37, %v1772_v36 }
  0xf2   : > { %v1150_v42 = vadd.f32 %v1149_v38, %v1061_v39  ;;  %v2022_v39 = vld [vmem:[%s2253_s18 + $0x1c4] sm:$0xf] }
  0xf3   : > { %v1777_v49 = vor.u32 %v2022_v39, %v1774_v40 }
  0xf4   : > { %v1395_v45 = vadd.f32 %v2431_v18, %v1150_v42  ;;  %v2025_v42 = vld [vmem:[%s2253_s18 + $0x1d4] sm:$0xf0] }
  0xf6   : > { %1427 = vst [vmem:[%s2436_s6 + $0x30] sm:$0xff] %v1395_v45 }
  0xf7   : > { %v1062_v53 = vpop.f32.mrf.mxu2  ;;  %v887_v58 = vpop.f32.mrf.mxu0 }
  0xf8   : > { %v1151_v54 = vpop.f32.mrf.mxu3  ;;  %v1063_v57 = vadd.f32 %v1062_v53, %v974_v52  ;;  %v976_v59 = vpop.f32.mrf.mxu1  ;;  %v1781_v53 = vor.u32 %v2025_v42, %v1780_v41 }
  0xf9   : > { %v977_v0 = vadd.f32 %v976_v59, %v887_v58 }
  0xfa   : > { %v1152_v62 = vadd.f32 %v1151_v54, %v1063_v57  ;;  %926 = vmatmul.bf16.gmra.mxu0 %v1741_v55  ;;  %v1785_v54 = vor.u32 %v2023_v43, %v1782_v44 }
  0xfb   : > { %1015 = vmatmul.bf16.gmra.mxu1 %v1745_v56 }
  0xfc   : > { %v1396_v63 = vadd.f32 %v2431_v18, %v1152_v62  ;;  %1104 = vmatmul.bf16.gmra.mxu2 %v1749_v60 }
  0xfd   : > { %1193 = vmatmul.bf16.gmra.mxu3 %v1753_v61 }
  0xfe   : > { %1428 = vst [vmem:[%s2436_s6 + $0x38] sm:$0xff] %v1396_v63 }
  0xff   : > { %v1065_v1 = vpop.f32.mrf.mxu2  ;;  %v889_v4 = vpop.f32.mrf.mxu0 }
 0x100   : > { %v1154_v2 = vpop.f32.mrf.mxu3  ;;  %v1066_v3 = vadd.f32 %v1065_v1, %v977_v0  ;;  %v978_v5 = vpop.f32.mrf.mxu1  ;;  %v1788_v0 = vld [vmem:[%s2253_s18 + $0x1e0] sm:$0xf]  ;;  %v2028_v1 = vld [vmem:[%s2253_s18 + $0x1ec] sm:$0xf0] }
 0x101   : > { %v979_v16 = vadd.f32 %v978_v5, %v889_v4  ;;  %v1790_v4 = vld [vmem:[%s2253_s18 + $0x1f0] sm:$0xf0]  ;;  %v1796_v5 = vld [vmem:[%s2253_s18 + $0x1e8] sm:$0xf]  ;;  %v1789_v12 = vor.u32 %v2028_v1, %v1788_v0 }
 0x102   : > { %v1155_v6 = vadd.f32 %v1154_v2, %v1066_v3  ;;  %v2026_v3 = vld [vmem:[%s2253_s18 + $0x1e4] sm:$0xf] }
 0x103   : > { %v1793_v13 = vor.u32 %v2026_v3, %v1790_v4 }
 0x104   : > { %v1397_v9 = vadd.f32 %v2431_v18, %v1155_v6  ;;  %v2029_v6 = vld [vmem:[%s2253_s18 + $0x1f4] sm:$0xf0] }
 0x106   : > { %1429 = vst [vmem:[%s2436_s6 + $0x40] sm:$0xff] %v1397_v9 }
 0x107   : > { %v1067_v17 = vpop.f32.mrf.mxu2  ;;  %v892_v23 = vpop.f32.mrf.mxu0 }
 0x108   : > { %v1156_v19 = vpop.f32.mrf.mxu3  ;;  %v1068_v22 = vadd.f32 %v1067_v17, %v979_v16  ;;  %v981_v24 = vpop.f32.mrf.mxu1  ;;  %v1797_v17 = vor.u32 %v2029_v6, %v1796_v5 }
 0x109   : > { %v982_v29 = vadd.f32 %v981_v24, %v892_v23 }
 0x10a   : > { %v1157_v27 = vadd.f32 %v1156_v19, %v1068_v22  ;;  %931 = vmatmul.bf16.gmra.mxu0 %v1757_v20  ;;  %v1801_v19 = vor.u32 %v2027_v7, %v1798_v8 }
 0x10b   : > { %1020 = vmatmul.bf16.gmra.mxu1 %v1761_v21 }
 0x10c   : > { %v1398_v28 = vadd.f32 %v2431_v18, %v1157_v27  ;;  %1109 = vmatmul.bf16.gmra.mxu2 %v1765_v25 }
 0x10d   : > { %1198 = vmatmul.bf16.gmra.mxu3 %v1769_v26 }
 0x10e   : > { %1430 = vst [vmem:[%s2436_s6 + $0x48] sm:$0xff] %v1398_v28 }
 0x10f   : > { %v1070_v30 = vpop.f32.mrf.mxu2  ;;  %v894_v33 = vpop.f32.mrf.mxu0 }
 0x110   : > { %v1159_v31 = vpop.f32.mrf.mxu3  ;;  %v1071_v32 = vadd.f32 %v1070_v30, %v982_v29  ;;  %v983_v34 = vpop.f32.mrf.mxu1 }
 0x111   : > { %v984_v45 = vadd.f32 %v983_v34, %v894_v33 }
 0x112   : > { %v1160_v35 = vadd.f32 %v1159_v31, %v1071_v32 }
 0x114   : > { %v1399_v38 = vadd.f32 %v2431_v18, %v1160_v35 }
 0x116   : > { %1431 = vst [vmem:[%s2436_s6 + $0x50] sm:$0xff] %v1399_v38 }
 0x117   : > { %v1072_v46 = vpop.f32.mrf.mxu2  ;;  %v897_v51 = vpop.f32.mrf.mxu0 }
 0x118   : > { %v1161_v47 = vpop.f32.mrf.mxu3  ;;  %v1073_v50 = vadd.f32 %v1072_v46, %v984_v45  ;;  %v986_v52 = vpop.f32.mrf.mxu1 }
 0x119   : > { %v987_v57 = vadd.f32 %v986_v52, %v897_v51 }
 0x11a   : > { %v1162_v55 = vadd.f32 %v1161_v47, %v1073_v50  ;;  %936 = vmatmul.bf16.gmra.mxu0 %v1773_v48 }
 0x11b   : > { %1025 = vmatmul.bf16.gmra.mxu1 %v1777_v49 }
 0x11c   : > { %v1400_v56 = vadd.f32 %v2431_v18, %v1162_v55  ;;  %1114 = vmatmul.bf16.gmra.mxu2 %v1781_v53 }
 0x11d   : > { %1203 = vmatmul.bf16.gmra.mxu3 %v1785_v54 }
 0x11e   : > { %1432 = vst [vmem:[%s2436_s6 + $0x58] sm:$0xff] %v1400_v56 }
 0x11f   : > { %v1075_v58 = vpop.f32.mrf.mxu2  ;;  %v899_v61 = vpop.f32.mrf.mxu0 }
 0x120   : > { %v1164_v59 = vpop.f32.mrf.mxu3  ;;  %v1076_v60 = vadd.f32 %v1075_v58, %v987_v57  ;;  %v988_v62 = vpop.f32.mrf.mxu1 }
 0x121   : > { %v989_v9 = vadd.f32 %v988_v62, %v899_v61 }
 0x122   : > { %v1165_v63 = vadd.f32 %v1164_v59, %v1076_v60 }
 0x124   : > { %v1401_v2 = vadd.f32 %v2431_v18, %v1165_v63 }
 0x126   : > { %1433 = vst [vmem:[%s2436_s6 + $0x60] sm:$0xff] %v1401_v2 }
 0x127   : > { %v1077_v10 = vpop.f32.mrf.mxu2  ;;  %v902_v15 = vpop.f32.mrf.mxu0 }
 0x128   : > { %v1166_v11 = vpop.f32.mrf.mxu3  ;;  %v1078_v14 = vadd.f32 %v1077_v10, %v989_v9  ;;  %v991_v16 = vpop.f32.mrf.mxu1 }
 0x129   : > { %v992_v22 = vadd.f32 %v991_v16, %v902_v15 }
 0x12a   : > { %v1167_v20 = vadd.f32 %v1166_v11, %v1078_v14  ;;  %941 = vmatmul.bf16.gmra.mxu0 %v1789_v12 }
 0x12b   : > { %1030 = vmatmul.bf16.gmra.mxu1 %v1793_v13 }
 0x12c   : > { %v1402_v21 = vadd.f32 %v2431_v18, %v1167_v20  ;;  %1119 = vmatmul.bf16.gmra.mxu2 %v1797_v17 }
 0x12d   : > { %1208 = vmatmul.bf16.gmra.mxu3 %v1801_v19 }
 0x12e   : > { %1434 = vst [vmem:[%s2436_s6 + $0x68] sm:$0xff] %v1402_v21 }
 0x12f   : > { %v1080_v23 = vpop.f32.mrf.mxu2  ;;  %v904_v26 = vpop.f32.mrf.mxu0 }
 0x130   : > { %v1169_v24 = vpop.f32.mrf.mxu3  ;;  %v1081_v25 = vadd.f32 %v1080_v23, %v992_v22  ;;  %v993_v27 = vpop.f32.mrf.mxu1 }
 0x131   : > { %v994_v30 = vadd.f32 %v993_v27, %v904_v26 }
 0x132   : > { %v1170_v28 = vadd.f32 %v1169_v24, %v1081_v25 }
 0x134   : > { %v1403_v29 = vadd.f32 %v2431_v18, %v1170_v28 }
 0x136   : > { %1435 = vst [vmem:[%s2436_s6 + $0x70] sm:$0xff] %v1403_v29 }
 0x137   : > { %v1082_v31 = vpop.f32.mrf.mxu2  ;;  %v907_v34 = vpop.f32.mrf.mxu0 }
 0x138   : > { %v1171_v32 = vpop.f32.mrf.mxu3  ;;  %v1083_v33 = vadd.f32 %v1082_v31, %v994_v30  ;;  %v996_v35 = vpop.f32.mrf.mxu1 }
 0x139   : > { %v997_v38 = vadd.f32 %v996_v35, %v907_v34 }
 0x13a   : > { %v1172_v36 = vadd.f32 %v1171_v32, %v1083_v33 }
 0x13c   : > { %v1404_v37 = vadd.f32 %v2431_v18, %v1172_v36 }
 0x13e   : > { %1436 = vst [vmem:[%s2436_s6 + $0x78] sm:$0xff] %v1404_v37 }
 0x13f   : > { %v1085_v39 = vpop.f32.mrf.mxu2  ;;  %v909_v42 = vpop.f32.mrf.mxu0 }
 0x140   : > { %v1174_v40 = vpop.f32.mrf.mxu3  ;;  %v1086_v41 = vadd.f32 %v1085_v39, %v997_v38  ;;  %v998_v43 = vpop.f32.mrf.mxu1 }
 0x141   : > { %v999_v46 = vadd.f32 %v998_v43, %v909_v42 }
 0x142   : > { %v1175_v44 = vadd.f32 %v1174_v40, %v1086_v41 }
 0x144   : > { %v1405_v45 = vadd.f32 %v2431_v18, %v1175_v44 }
 0x146   : > { %1437 = vst [vmem:[%s2436_s6 + $0x80] sm:$0xff] %v1405_v45 }
 0x147   : > { %v1087_v47 = vpop.f32.mrf.mxu2  ;;  %v912_v50 = vpop.f32.mrf.mxu0 }
 0x148   : > { %v1176_v48 = vpop.f32.mrf.mxu3  ;;  %v1088_v49 = vadd.f32 %v1087_v47, %v999_v46  ;;  %v1001_v51 = vpop.f32.mrf.mxu1 }
 0x149   : > { %v1002_v54 = vadd.f32 %v1001_v51, %v912_v50 }
 0x14a   : > { %v1177_v52 = vadd.f32 %v1176_v48, %v1088_v49 }
 0x14c   : > { %v1406_v53 = vadd.f32 %v2431_v18, %v1177_v52 }
 0x14e   : > { %1438 = vst [vmem:[%s2436_s6 + $0x88] sm:$0xff] %v1406_v53 }
 0x14f   : > { %v1090_v55 = vpop.f32.mrf.mxu2  ;;  %v914_v58 = vpop.f32.mrf.mxu0 }
 0x150   : > { %v1179_v56 = vpop.f32.mrf.mxu3  ;;  %v1091_v57 = vadd.f32 %v1090_v55, %v1002_v54  ;;  %v1003_v59 = vpop.f32.mrf.mxu1 }
 0x151   : > { %v1004_v62 = vadd.f32 %v1003_v59, %v914_v58 }
 0x152   : > { %v1180_v60 = vadd.f32 %v1179_v56, %v1091_v57 }
 0x154   : > { %v1407_v61 = vadd.f32 %v2431_v18, %v1180_v60 }
 0x156   : > { %1439 = vst [vmem:[%s2436_s6 + $0x90] sm:$0xff] %v1407_v61 }
 0x157   : > { %v1092_v63 = vpop.f32.mrf.mxu2  ;;  %v917_v2 = vpop.f32.mrf.mxu0 }
 0x158   : > { %v1181_v0 = vpop.f32.mrf.mxu3  ;;  %v1093_v1 = vadd.f32 %v1092_v63, %v1004_v62  ;;  %v1006_v3 = vpop.f32.mrf.mxu1 }
 0x159   : > { %v1007_v6 = vadd.f32 %v1006_v3, %v917_v2 }
 0x15a   : > { %v1182_v4 = vadd.f32 %v1181_v0, %v1093_v1 }
 0x15c   : > { %v1408_v5 = vadd.f32 %v2431_v18, %v1182_v4 }
 0x15e   : > { %1440 = vst [vmem:[%s2436_s6 + $0x98] sm:$0xff] %v1408_v5 }
 0x15f   : > { %v1095_v7 = vpop.f32.mrf.mxu2  ;;  %v919_v10 = vpop.f32.mrf.mxu0 }
 0x160   : > { %v1184_v8 = vpop.f32.mrf.mxu3  ;;  %v1096_v9 = vadd.f32 %v1095_v7, %v1007_v6  ;;  %v1008_v11 = vpop.f32.mrf.mxu1 }
 0x161   : > { %v1009_v14 = vadd.f32 %v1008_v11, %v919_v10 }
 0x162   : > { %v1185_v12 = vadd.f32 %v1184_v8, %v1096_v9 }
 0x164   : > { %v1409_v13 = vadd.f32 %v2431_v18, %v1185_v12 }
 0x166   : > { %1441 = vst [vmem:[%s2436_s6 + $0xa0] sm:$0xff] %v1409_v13 }
 0x167   : > { %v1097_v15 = vpop.f32.mrf.mxu2  ;;  %v922_v19 = vpop.f32.mrf.mxu0 }
 0x168   : > { %v1186_v16 = vpop.f32.mrf.mxu3  ;;  %v1098_v17 = vadd.f32 %v1097_v15, %v1009_v14  ;;  %v1011_v20 = vpop.f32.mrf.mxu1 }
 0x169   : > { %v1012_v23 = vadd.f32 %v1011_v20, %v922_v19 }
 0x16a   : > { %v1187_v21 = vadd.f32 %v1186_v16, %v1098_v17 }
 0x16c   : > { %v1410_v22 = vadd.f32 %v2431_v18, %v1187_v21 }
 0x16e   : > { %1442 = vst [vmem:[%s2436_s6 + $0xa8] sm:$0xff] %v1410_v22 }
 0x16f   : > { %v1100_v24 = vpop.f32.mrf.mxu2  ;;  %v924_v27 = vpop.f32.mrf.mxu0 }
 0x170   : > { %v1189_v25 = vpop.f32.mrf.mxu3  ;;  %v1101_v26 = vadd.f32 %v1100_v24, %v1012_v23  ;;  %v1013_v28 = vpop.f32.mrf.mxu1 }
 0x171   : > { %v1014_v31 = vadd.f32 %v1013_v28, %v924_v27 }
 0x172   : > { %v1190_v29 = vadd.f32 %v1189_v25, %v1101_v26 }
 0x174   : > { %v1411_v30 = vadd.f32 %v2431_v18, %v1190_v29 }
 0x176   : > { %1443 = vst [vmem:[%s2436_s6 + $0xb0] sm:$0xff] %v1411_v30 }
 0x177   : > { %v1102_v32 = vpop.f32.mrf.mxu2  ;;  %v927_v35 = vpop.f32.mrf.mxu0 }
 0x178   : > { %v1191_v33 = vpop.f32.mrf.mxu3  ;;  %v1103_v34 = vadd.f32 %v1102_v32, %v1014_v31  ;;  %v1016_v36 = vpop.f32.mrf.mxu1 }
 0x179   : > { %v1017_v39 = vadd.f32 %v1016_v36, %v927_v35 }
 0x17a   : > { %v1192_v37 = vadd.f32 %v1191_v33, %v1103_v34 }
 0x17c   : > { %v1412_v38 = vadd.f32 %v2431_v18, %v1192_v37 }
 0x17e   : > { %1444 = vst [vmem:[%s2436_s6 + $0xb8] sm:$0xff] %v1412_v38 }
 0x17f   : > { %v1105_v40 = vpop.f32.mrf.mxu2  ;;  %v929_v43 = vpop.f32.mrf.mxu0 }
 0x180   : > { %v1194_v41 = vpop.f32.mrf.mxu3  ;;  %v1106_v42 = vadd.f32 %v1105_v40, %v1017_v39  ;;  %v1018_v44 = vpop.f32.mrf.mxu1 }
 0x181   : > { %v1019_v47 = vadd.f32 %v1018_v44, %v929_v43 }
 0x182   : > { %v1195_v45 = vadd.f32 %v1194_v41, %v1106_v42 }
 0x184   : > { %v1413_v46 = vadd.f32 %v2431_v18, %v1195_v45 }
 0x186   : > { %1445 = vst [vmem:[%s2436_s6 + $0xc0] sm:$0xff] %v1413_v46 }
 0x187   : > { %v1107_v48 = vpop.f32.mrf.mxu2  ;;  %v932_v51 = vpop.f32.mrf.mxu0 }
 0x188   : > { %v1196_v49 = vpop.f32.mrf.mxu3  ;;  %v1108_v50 = vadd.f32 %v1107_v48, %v1019_v47  ;;  %v1021_v52 = vpop.f32.mrf.mxu1 }
 0x189   : > { %v1022_v55 = vadd.f32 %v1021_v52, %v932_v51 }
 0x18a   : > { %v1197_v53 = vadd.f32 %v1196_v49, %v1108_v50 }
 0x18c   : > { %v1414_v54 = vadd.f32 %v2431_v18, %v1197_v53 }
 0x18e   : > { %1446 = vst [vmem:[%s2436_s6 + $0xc8] sm:$0xff] %v1414_v54 }
 0x18f   : > { %v1110_v56 = vpop.f32.mrf.mxu2  ;;  %v934_v59 = vpop.f32.mrf.mxu0 }
 0x190   : > { %v1199_v57 = vpop.f32.mrf.mxu3  ;;  %v1111_v58 = vadd.f32 %v1110_v56, %v1022_v55  ;;  %v1023_v60 = vpop.f32.mrf.mxu1 }
 0x191   : > { %v1024_v63 = vadd.f32 %v1023_v60, %v934_v59 }
 0x192   : > { %v1200_v61 = vadd.f32 %v1199_v57, %v1111_v58 }
 0x194   : > { %v1415_v62 = vadd.f32 %v2431_v18, %v1200_v61 }
 0x196   : > { %1447 = vst [vmem:[%s2436_s6 + $0xd0] sm:$0xff] %v1415_v62 }
 0x197   : > { %v1112_v0 = vpop.f32.mrf.mxu2  ;;  %v937_v3 = vpop.f32.mrf.mxu0 }
 0x198   : > { %v1201_v1 = vpop.f32.mrf.mxu3  ;;  %v1113_v2 = vadd.f32 %v1112_v0, %v1024_v63  ;;  %v1026_v4 = vpop.f32.mrf.mxu1 }
 0x199   : > { %v1027_v7 = vadd.f32 %v1026_v4, %v937_v3 }
 0x19a   : > { %v1202_v5 = vadd.f32 %v1201_v1, %v1113_v2 }
 0x19c   : > { %v1416_v6 = vadd.f32 %v2431_v18, %v1202_v5 }
 0x19e   : > { %1448 = vst [vmem:[%s2436_s6 + $0xd8] sm:$0xff] %v1416_v6 }
 0x19f   : > { %v1115_v8 = vpop.f32.mrf.mxu2  ;;  %v939_v11 = vpop.f32.mrf.mxu0 }
 0x1a0   : > { %v1204_v9 = vpop.f32.mrf.mxu3  ;;  %v1116_v10 = vadd.f32 %v1115_v8, %v1027_v7  ;;  %v1028_v12 = vpop.f32.mrf.mxu1 }
 0x1a1   : > { %v1029_v15 = vadd.f32 %v1028_v12, %v939_v11 }
 0x1a2   : > { %v1205_v13 = vadd.f32 %v1204_v9, %v1116_v10 }
 0x1a4   : > { %v1417_v14 = vadd.f32 %v2431_v18, %v1205_v13 }
 0x1a6   : > { %1449 = vst [vmem:[%s2436_s6 + $0xe0] sm:$0xff] %v1417_v14 }
 0x1a7   : > { %v1117_v16 = vpop.f32.mrf.mxu2  ;;  %v942_v20 = vpop.f32.mrf.mxu0 }
 0x1a8   : > { %v1206_v17 = vpop.f32.mrf.mxu3  ;;  %v1118_v19 = vadd.f32 %v1117_v16, %v1029_v15  ;;  %v1031_v21 = vpop.f32.mrf.mxu1 }
 0x1a9   : > { %v1032_v24 = vadd.f32 %v1031_v21, %v942_v20 }
 0x1aa   : > { %v1207_v22 = vadd.f32 %v1206_v17, %v1118_v19 }
 0x1ac   : > { %v1418_v23 = vadd.f32 %v2431_v18, %v1207_v22 }
 0x1ae   : > { %1450 = vst [vmem:[%s2436_s6 + $0xe8] sm:$0xff] %v1418_v23 }
 0x1af   : > { %v1120_v25 = vpop.f32.mrf.mxu2  ;;  %v944_v29 = vpop.f32.mrf.mxu0 }
 0x1b0   : > { %v1209_v26 = vpop.f32.mrf.mxu3  ;;  %v1121_v27 = vadd.f32 %v1120_v25, %v1032_v24  ;;  %v1033_v30 = vpop.f32.mrf.mxu1 }
 0x1b1   : > { %v1034_v32 = vadd.f32 %v1033_v30, %v944_v29 }
 0x1b2   : > { %v1210_v28 = vadd.f32 %v1209_v26, %v1121_v27 }
 0x1b4   : > { %v1419_v31 = vadd.f32 %v2431_v18, %v1210_v28 }
 0x1b6   : > { %1451 = vst [vmem:[%s2436_s6 + $0xf0] sm:$0xff] %v1419_v31 }
 0x1b7   : > { %v1122_v33 = vpop.f32.mrf.mxu2 }
 0x1b8   : > { %v1123_v34 = vadd.f32 %v1122_v33, %v1034_v32  ;;  %v1211_v35 = vpop.f32.mrf.mxu3 }
 0x1ba   : > { %v1212_v36 = vadd.f32 %v1211_v35, %v1123_v34 }
 0x1bc   : > { %v1420_v37 = vadd.f32 %v2431_v18, %v1212_v36 }
 0x1be   : > { %1452 = vst [vmem:[%s2436_s6 + $0xf8] sm:$0xff] %v1420_v37 }
 0x1bf PF: > { %s16_s17 = sadd.s32 1, %s2168_s17   ;;  %s2582_s12 = smov %s2152_s13 }
 0x1c0   : > { %p13_p0 = scmp.ge.s32.totalorder %s16_s17, 4   ;;  %s2583_s13 = smov %s2156_s14 }
 0x1c1   : > { %s2584_s14 = smov %s2241_s24  ;;  %s2585_s15 = smov %s2164_s16 }
 0x1c2   : > { %s2586_s16 = smov %s2588_s19  ;;  %15 = sbr.rel (!%p13_p0) target bundleno = 4 (0x4), region = 85 }
 0x1c7   :  { %1475 = vsyncpa [#allocation3], 1 }
 0x1c8   :  { %1477 = vsyncpa [#allocation3 + $0x1], 1 }

</bundles_post_ra>
